<compile_context>
chip_gen: v5e
topology: v5e:2x2
jax: 0.10.0
libtpu: 0.0.40
codegen_flags: <defaults>
</compile_context>

<pallas_src>
import functools

import jax
import jax.numpy as jnp
from jax.experimental import pallas as pl
from jax.experimental.pallas import tpu as pltpu


def _sigmoid_via_tanh(x):
    # sigmoid(x) == 0.5 * (tanh(0.5 * x) + 1): exact, single EUP op per vreg.
    return 0.5 * (jnp.tanh(0.5 * x) + 1.0)


def _ipd_kernel(zi_ref, zjT_ref, adj_ref, *, precision):
    # zi_ref : (tm, D)          row tile of z
    # zjT_ref: (D, tn) or (D,N) column tile of z.T, or fully VMEM-resident z.T
    # adj_ref: (tm, tn) / (tm,N) output tile / slab
    s = jnp.dot(
        zi_ref[...],
        zjT_ref[...],
        preferred_element_type=jnp.float32,
        precision=precision,
    )
    adj_ref[...] = _sigmoid_via_tanh(s).astype(adj_ref.dtype)


def _pick_tile(n, desired):
    # Prefer big lane/sublane-aligned tiles; cdiv grid handles partial blocks,
    # so n does not need to be divisible by the tile.
    for t in (desired, 512, 256, 128):
        if t <= n:
            return t
    return n  # n < 128: full extent is always a valid block shape


def inner_product_decoder(
    z,
    *,
    tm=512,
    tn=512,
    out_dtype=jnp.float32,          # jnp.bfloat16 halves output HBM traffic (~2x)
    precision=None,                 # None -> auto (HIGHEST small D, HIGH large D)
    resident_bytes_budget=16 * 1024 * 1024,  # safe on v7x; raise to 32-48 MiB on v5e/v6e
):
    """adj = sigmoid(z @ z.T); z: (N, D) -> (N, N) out_dtype."""
    N, D = z.shape
    in_itemsize = z.dtype.itemsize
    out_itemsize = jnp.dtype(out_dtype).itemsize

    tm = _pick_tile(N, tm)
    tn = _pick_tile(N, tn)

    if precision is None:
        # Small D: multi-pass f32 MXU work is hidden under the N^2 writeback.
        # Larger D: HIGH (bf16x3) keeps the kernel write-bound on v5e/v7x.
        precision = (
            jax.lax.Precision.HIGHEST if D <= 96 else jax.lax.Precision.HIGH
        )

    # One-time O(N*D) transpose outside the kernel; negligible vs O(N^2) output.
    zT = z.T

    kernel = functools.partial(_ipd_kernel, precision=precision)

    # Resident fast path: whole z.T in VMEM (single copy) + full-width output
    # slabs; kills the column grid axis and all redundant RHS reads.
    resident_bytes = (
        N * D * in_itemsize            # z.T, single-buffered (memory_space=VMEM)
        + 2 * tm * D * in_itemsize     # double-buffered z row tiles
        + 2 * tm * N * out_itemsize    # double-buffered output slabs
    )
    resident = resident_bytes <= resident_bytes_budget

    if resident:
        grid = (pl.cdiv(N, tm),)
        in_specs = [
            pl.BlockSpec((tm, D), lambda i: (i, 0)),
            pl.BlockSpec(memory_space=pltpu.MemorySpace.VMEM),  # full z.T, once
        ]
        out_specs = pl.BlockSpec((tm, N), lambda i: (i, 0))
        dim_sem = ("parallel",)
        vmem_needed = resident_bytes
        bytes_accessed = 2 * N * D * in_itemsize + N * N * out_itemsize
    else:
        grid = (pl.cdiv(N, tm), pl.cdiv(N, tn))
        in_specs = [
            pl.BlockSpec((tm, D), lambda i, j: (i, 0)),
            pl.BlockSpec((D, tn), lambda i, j: (0, j)),
        ]
        out_specs = pl.BlockSpec((tm, tn), lambda i, j: (i, j))
        dim_sem = ("parallel", "parallel")
        vmem_needed = (
            2 * tm * D * in_itemsize
            + 2 * D * tn * in_itemsize
            + 2 * tm * tn * out_itemsize
        )
        # RHS column tiles are re-read once per row tile.
        bytes_accessed = (
            N * D * in_itemsize
            + pl.cdiv(N, tm) * N * D * in_itemsize
            + N * N * out_itemsize
        )

    # Always set the scoped-VMEM limit (v5e default is only 16 MiB); cap well
    # below v7x's 64 MiB physical to leave room for Mosaic internal scratch.
    vmem_limit = int(
        min(max(vmem_needed * 5 // 4, 32 * 1024 * 1024), 48 * 1024 * 1024)
    )

    cost = pl.CostEstimate(
        flops=2 * N * N * D,
        transcendentals=N * N,
        bytes_accessed=bytes_accessed,
    )

    # NOTE: if profiling ever shows exposed output DMA at the chosen tile size,
    # sweep pipeline_mode=pl.Buffered(3) on out_specs (cheap; revert on v7x if
    # VMEM-pressured).
    return pl.pallas_call(
        kernel,
        out_shape=jax.ShapeDtypeStruct((N, N), out_dtype),
        grid_spec=pltpu.PrefetchScalarGridSpec(
            num_scalar_prefetch=0,
            grid=grid,
            in_specs=in_specs,
            out_specs=out_specs,
        ),
        compiler_params=pltpu.CompilerParams(
            dimension_semantics=dim_sem,
            vmem_limit_bytes=vmem_limit,
        ),
        cost_estimate=cost,
    )(z, zT)


if __name__ == "__main__":
    key = jax.random.PRNGKey(0)
    N, D = 256, 32  # small node-embedding matrix
    z = jax.random.normal(key, (N, D), dtype=jnp.float32)

    # Resident fast path (default budget).
    adj = inner_product_decoder(z)
    adj = jax.block_until_ready(adj)

    ref = jax.nn.sigmoid(jnp.dot(z, z.T, precision=jax.lax.Precision.HIGHEST))
    assert adj.shape == (N, N)
    assert adj.dtype == jnp.float32
    assert jnp.allclose(adj, ref, atol=1e-5, rtol=1e-5)

    # Also exercise the tiled path with a cdiv (non-tile-divisible) N.
    N2, D2 = 320, 32
    z2 = jax.random.normal(jax.random.PRNGKey(1), (N2, D2), dtype=jnp.float32)
    adj2 = jax.block_until_ready(
        inner_product_decoder(z2, resident_bytes_budget=0)  # force tiled mode
    )
    ref2 = jax.nn.sigmoid(jnp.dot(z2, z2.T, precision=jax.lax.Precision.HIGHEST))
    assert adj2.shape == (N2, N2)
    assert jnp.allclose(adj2, ref2, atol=1e-5, rtol=1e-5)

    print("KERNEL_OK")
</pallas_src>

<mosaic_0001>
module attributes {stable_mosaic.version = 11 : i64} {
  func.func @_ipd_kernel(%arg0: i32, %arg1: memref<256x32xf32, #tpu.memory_space<vmem>>, %arg2: memref<32x256xf32, #tpu.memory_space<vmem>>, %arg3: memref<256x256xf32, #tpu.memory_space<vmem>>) attributes {dimension_semantics = [#tpu.dimension_semantics<parallel>], iteration_bounds = array<i64: 1>, scalar_prefetch = 0 : i64, scratch_operands = 0 : i64, tpu.core_type = #tpu.core_type<tc>, window_params = [{transform_indices = @transform_0, window_bounds = array<i64: 256, 32>}, {pipeline_mode = #tpu.pipeline_mode<synchronous>, transform_indices = @transform_1, window_bounds = array<i64: 32, 256>}, {transform_indices = @transform_2, window_bounds = array<i64: 256, 256>}]} {
    %c0 = arith.constant 0 : index
    %c0_0 = arith.constant 0 : index
    %0 = vector.load %arg1[%c0, %c0_0] : memref<256x32xf32, #tpu.memory_space<vmem>>, vector<256x32xf32>
    %c0_1 = arith.constant 0 : index
    %c0_2 = arith.constant 0 : index
    %1 = vector.load %arg2[%c0_1, %c0_2] : memref<32x256xf32, #tpu.memory_space<vmem>>, vector<32x256xf32>
    %cst = arith.constant dense<0.000000e+00> : vector<256x256xf32>
    %2 = tpu.matmul %0, %1, %cst {dimension_numbers = #tpu.dot_dimension_numbers<[1], [0], [0], [1], [0, 0, 1, 1], [], []>, precision = #tpu.contract_precision<fp32>} : vector<256x32xf32>, vector<32x256xf32>, vector<256x256xf32> -> vector<256x256xf32>
    %cst_3 = arith.constant 5.000000e-01 : f32
    %3 = vector.broadcast %cst_3 : f32 to vector<256x256xf32>
    %4 = arith.mulf %3, %2 : vector<256x256xf32>
    %5 = math.tanh %4 : vector<256x256xf32>
    %cst_4 = arith.constant 1.000000e+00 : f32
    %6 = vector.broadcast %cst_4 : f32 to vector<256x256xf32>
    %7 = arith.addf %5, %6 : vector<256x256xf32>
    %cst_5 = arith.constant 5.000000e-01 : f32
    %8 = vector.broadcast %cst_5 : f32 to vector<256x256xf32>
    %9 = arith.mulf %8, %7 : vector<256x256xf32>
    %c0_6 = arith.constant 0 : index
    %c0_7 = arith.constant 0 : index
    %10 = vector.load %arg3[%c0_6, %c0_7] : memref<256x256xf32, #tpu.memory_space<vmem>>, vector<256x256xf32>
    tpu.vector_store %arg3[%c0_6, %c0_7], %9 {strides = array<i32>} : memref<256x256xf32, #tpu.memory_space<vmem>>, vector<256x256xf32>,
    return
  }
  func.func @transform_0(%arg0: i32) -> (i32, i32) {
    %c0_i32 = arith.constant 0 : i32
    %c0_i32_0 = arith.constant 0 : i32
    return %arg0, %c0_i32 : i32, i32
  }
  func.func @transform_1(%arg0: i32) -> (i32, i32) {
    %c0_i32 = arith.constant 0 : i32
    %c0_i32_0 = arith.constant 0 : i32
    %c0_i32_1 = arith.constant 0 : i32
    return %c0_i32, %c0_i32_0 : i32, i32
  }
  func.func @transform_2(%arg0: i32) -> (i32, i32) {
    %c0_i32 = arith.constant 0 : i32
    %c0_i32_0 = arith.constant 0 : i32
    return %arg0, %c0_i32 : i32, i32
  }
}

</mosaic_0001>

<bundles_post_ra>
// kernel: tpu_custom_call.1
= control target key start
LH: loop header
LB: loop body
LE: loop exit
PB: predicated region body
PF: predicated region fallthrough
CT: control target
= control target key end

     0   :  { %vm52_vm0 = vcmask 261120   ;;  %s4138_s0 = inlined_call_operand.vmem [shape: f32[256,32], index: 0, kind: input, shape index: {}]   ;;  %s4139_s1 = inlined_call_operand.vmem [shape: f32[32,256], index: 1, kind: input, shape index: {}]   ;;  %s4140_s2 = inlined_call_operand.hbm [shape: f32[256,256], index: 2, kind: output, shape index: {}]  }
   0x1   :  { %v50_v0 = vld [vmem:[%s4139_s1 + $0x30] sm:$0xff]  ;;  %v48_v1 = vld [vmem:[%s4139_s1 + $0x20] sm:$0xff]  ;;  %v51_v8 = vld [vmem:[%s4139_s1 + $0x38] sm:$0xff] }
   0x2   :  { %v46_v2 = vld [vmem:[%s4139_s1 + $0x10] sm:$0xff]  ;;  %v2963_v3 = vand.u32 4294901760, %v50_v0  ;;  %v2965_v4 = vand.u32 4294901760, %v48_v1  ;;  %v44_v6 = vld [vmem:[%s4139_s1] sm:$0xff]  ;;  %v2981_v11 = vand.u32 4294901760, %v51_v8  ;;  %v13_v12 = vld [vmem:[%s4138_s0 + $0x8] sm:$0xff] }
   0x3   :  { %v2967_v5 = vand.u32 4294901760, %v46_v2  ;;  %v12_v7 = vld [vmem:[%s4138_s0] sm:$0xff]  ;;  %v2978_v9 = vand.u32 4294901760, %v44_v6  ;;  %v14_v13 = vld [vmem:[%s4138_s0 + $0x10] sm:$0xff] }
   0x4   :  { %v54_v10 = vsel %vm52_vm0, %v12_v7, 0  ;;  %162 = vmatpush.msra.mxu0 %v2963_v3  ;;  %v439_v14 = vsub.f32 %v50_v0, %v2963_v3  ;;  %789 = vmatpush.msra.mxu3 %v2963_v3  ;;  %v445_v15 = vsub.f32 %v48_v1, %v2965_v4 }
   0x5   :  { %v451_v16 = vsub.f32 %v46_v2, %v2967_v5  ;;  %v2994_v17 = vand.u32 4294901760, %v54_v10 }
   0x6   :  { %7 = vsyncpa [#allocation3], 0  ;;  %v457_v18 = vsub.f32 %v44_v6, %v2978_v9  ;;  %v2998_v19 = vsub.f32 %v51_v8, %v2981_v11  ;;  %v57_v20 = vsel %vm52_vm0, %v13_v12, 0  ;;  %v60_v21 = vsel %vm52_vm0, %v14_v13, 0  ;;  %164 = vmatpush.msra.mxu0 %v2965_v4  ;;  %605 = vmatpush.msra.mxu2 %v439_v14  ;;  %v15_v44 = vld [vmem:[%s4138_s0 + $0x18] sm:$0xff]  ;;  %v16_v52 = vld [vmem:[%s4138_s0 + $0x20] sm:$0xff] }
   0x7   :  { %v440_v22 = vand.u32 4294901760, %v439_v14  ;;  %v3004_v23 = vsub.f32 %v54_v10, %v2994_v17  ;;  %v446_v24 = vand.u32 4294901760, %v445_v15  ;;  %v452_v25 = vand.u32 4294901760, %v451_v16  ;;  %791 = vmatpush.msra.mxu3 %v2965_v4  ;;  %v17_v59 = vld [vmem:[%s4138_s0 + $0x28] sm:$0xff]  ;;  %v18_v2 = vld [vmem:[%s4138_s0 + $0x30] sm:$0xff]  ;;  %s2767_s7 = sshll.u32 %s4140_s2, 4  ;;  %s2768_s7 = int_to_ptr.hbm [resolvable:$true] %s2767_s7 }
   0x8   :  { %v4142_v26 = vand.u32 4294901760, %v2998_v19  ;;  %v458_v27 = vand.u32 4294901760, %v457_v18  ;;  %v3008_v28 = vand.u32 4294901760, %v57_v20  ;;  %166 = vmatpush.msra.mxu0 %v2967_v5  ;;  %608 = vmatpush.msra.mxu2 %v445_v15  ;;  %v3021_v35 = vand.u32 4294901760, %v60_v21  ;;  %v49_v13 = vld [vmem:[%s4139_s1 + $0x28] sm:$0xff]  ;;  %s2937_s8 = smov 256  }
   0x9   :  { %4242 = vst [vmem:[#allocation5_spill] sm:$0xff] %v3004_v23  ;;  %v441_v29 = vsub.f32 %v439_v14, %v440_v22  ;;  %v3012_v30 = vand.u32 4294901760, %v3004_v23  ;;  %v447_v31 = vsub.f32 %v445_v15, %v446_v24  ;;  %v453_v32 = vsub.f32 %v451_v16, %v452_v25  ;;  %793 = vmatpush.msra.mxu3 %v2967_v5  ;;  %s2938_s9 = smov 16  }
   0xa   :  { %v1587_v33 = vsub.f32 %v2998_v19, %v4142_v26  ;;  %v3019_v34 = vsub.f32 %v57_v20, %v3008_v28  ;;  %168 = vmatpush.msra.mxu0 %v2978_v9  ;;  %611 = vmatpush.msra.mxu2 %v451_v16  ;;  %v459_v39 = vsub.f32 %v457_v18, %v458_v27  ;;  %v63_v48 = vsel %vm52_vm0, %v15_v44, 0 }
   0xb   :  { %4243 = vst [vmem:[#allocation6_spill] sm:$0xff] %v3012_v30  ;;  %v442_v36 = vand.u32 4294901760, %v441_v29  ;;  %v172_v37 = vsub.f32 %v3004_v23, %v3012_v30  ;;  %v448_v38 = vand.u32 4294901760, %v447_v31  ;;  %795 = vmatpush.msra.mxu3 %v2978_v9  ;;  %v454_v43 = vand.u32 4294901760, %v453_v32 }
   0xc   :  { %4244 = vst [vmem:[#allocation7_spill] sm:$0xff] %v3019_v34  ;;  %1004 = vmatpush.msrb.mxu0 %v440_v22  ;;  %v1588_v40 = vand.u32 4294901760, %v1587_v33  ;;  %v3028_v41 = vand.u32 4294901760, %v3019_v34  ;;  %614 = vmatpush.msra.mxu2 %v457_v18  ;;  %v460_v45 = vand.u32 4294901760, %v459_v39  ;;  %v3041_v47 = vsub.f32 %v60_v21, %v3021_v35 }
   0xd   :  { %443 = vmatpush.msra.mxu1 %v442_v36  ;;  %v3030_v42 = vand.u32 4294901760, %v172_v37  ;;  %617 = vmatmul.f32.vlgmr.msra.gmra.mxu2 %v3004_v23  ;;  %v3050_v51 = vand.u32 4294901760, %v63_v48  ;;  %v66_v55 = vsel %vm52_vm0, %v16_v52, 0  ;;  %v69_v62 = vsel %vm52_vm0, %v17_v59, 0 }
   0xe   :  { %4245 = vst [vmem:[#allocation8_spill] sm:$0xff] %v3028_v41  ;;  %799 = vmatmul.f32.vlgmr.msra.gmra.mxu3 %v3012_v30  ;;  %v180_v46 = vsub.f32 %v3019_v34, %v3028_v41  ;;  %1308 = vmatpush.msrb.mxu2 %v2981_v11  ;;  %v3048_v50 = vand.u32 4294901760, %v3041_v47  ;;  %v3074_v58 = vand.u32 4294901760, %v66_v55  ;;  %v3096_v1 = vand.u32 4294901760, %v69_v62 }
   0xf   :  { %174 = vmatmul.f32.vlgmr.msra.gmra.mxu0 %v3030_v42  ;;  %449 = vmatpush.msra.mxu1 %v448_v38  ;;  %4246 = vst [vmem:[#allocation9_spill] sm:$0xff] %v3041_v47  ;;  %v3063_v54 = vsub.f32 %v63_v48, %v3050_v51  ;;  %v3134_v15 = vand.u32 4294901760, %v49_v13  ;;  %v21_v38 = vld [vmem:[%s4138_s0 + $0x48] sm:$0xff]  ;;  %v22_v48 = vld [vmem:[%s4138_s0 + $0x50] sm:$0xff] }
  0x10   :  { %1589 = vmatpush.msrb.mxu3 %v1588_v40  ;;  %1008 = vmatpush.msrb.mxu0 %v446_v24  ;;  %v3045_v49 = vand.u32 4294901760, %v180_v46  ;;  %4247 = vst [vmem:[#allocation10_spill] sm:$0xff] %v3048_v50  ;;  %v188_v53 = vsub.f32 %v3041_v47, %v3048_v50  ;;  %v3088_v61 = vsub.f32 %v66_v55, %v3074_v58  ;;  %v20_v24 = vld [vmem:[%s4138_s0 + $0x40] sm:$0xff]  ;;  %v84_v55 = vsel %vm52_vm0, %v22_v48, 0 }
  0x11   :  { %455 = vmatpush.msra.mxu1 %v454_v43  ;;  %4248 = vst [vmem:[#allocation11_spill] sm:$0xff] %v3063_v54  ;;  %v3072_v57 = vand.u32 4294901760, %v3063_v54  ;;  %1310 = vmatpush.msrb.mxu2 %v3134_v15  ;;  %v3138_v16 = vsub.f32 %v49_v13, %v3134_v15  ;;  %v78_v31 = vsel %vm52_vm0, %v20_v24, 0  ;;  %v81_v43 = vsel %vm52_vm0, %v21_v38, 0  ;;  %v24_v24 = vld [vmem:[%s4138_s0 + $0x60] sm:$0xff] }
  0x12   :  { %1012 = vmatpush.msrb.mxu0 %v452_v25  ;;  %v3069_v56 = vand.u32 4294901760, %v188_v53  ;;  %4250 = vst [vmem:[#allocation13_spill] sm:$0xff] %v3088_v61  ;;  %v3094_v0 = vand.u32 4294901760, %v3088_v61  ;;  %v3171_v37 = vand.u32 4294901760, %v78_v31  ;;  %v3191_v46 = vand.u32 4294901760, %v81_v43 }
  0x13   :  { %461 = vmatpush.msra.mxu1 %v460_v45  ;;  %4249 = vst [vmem:[#allocation12_spill] sm:$0xff] %v3072_v57  ;;  %v196_v60 = vsub.f32 %v3063_v54, %v3072_v57  ;;  %v4141_v22 = vand.u32 4294901760, %v3138_v16 }
  0x14   :  { %463 = vmatmul.f32.vlgmr.msra.gmra.mxu1 %v2994_v17  ;;  %1016 = vmatpush.msrb.mxu0 %v458_v27  ;;  %4251 = vst [vmem:[#allocation14_spill] sm:$0xff] %v3094_v0  ;;  %v3183_v40 = vsub.f32 %v78_v31, %v3171_v37  ;;  %v3203_v53 = vsub.f32 %v81_v43, %v3191_v46  ;;  %v90_v31 = vsel %vm52_vm0, %v24_v24, 0  ;;  %v25_v43 = vld [vmem:[%s4138_s0 + $0x68] sm:$0xff]  ;;  %v26_v24 = vld [vmem:[%s4138_s0 + $0x70] sm:$0xff] }
  0x15   :  { %1159 = vmatpush.msrb.mxu1 %v2963_v3  ;;  %622 = vmatmul.f32.gmra.mxu2 %v3019_v34  ;;  %v3091_v63 = vand.u32 4294901760, %v196_v60  ;;  %v204_v3 = vsub.f32 %v3088_v61, %v3094_v0  ;;  %v1593_v25 = vsub.f32 %v3138_v16, %v4141_v22 }
  0x16   :  { %805 = vmatmul.f32.gmra.mxu3 %v3028_v41  ;;  %1751 = vmatpush.msra.mxu0 %v2998_v19  ;;  %4258 = vst [vmem:[#allocation21_spill] sm:$0xff] %v3183_v40  ;;  %v3189_v45 = vand.u32 4294901760, %v3183_v40  ;;  %v3209_v60 = vand.u32 4294901760, %v3203_v53 }
  0x17   :  { %182 = vmatmul.f32.gmra.mxu0 %v3045_v49  ;;  %1161 = vmatpush.msrb.mxu1 %v2965_v4  ;;  %v3108_v4 = vsub.f32 %v69_v62, %v3096_v1  ;;  %v3111_v6 = vand.u32 4294901760, %v204_v3  ;;  %v1594_v32 = vand.u32 4294901760, %v1593_v25  ;;  %4260 = vst [vmem:[#allocation23_spill] sm:$0xff] %v3203_v53  ;;  %v3211_v62 = vand.u32 4294901760, %v84_v55 }
  0x18   :  { %1754 = vmatpush.msra.mxu0 %v3138_v16  ;;  %4259 = vst [vmem:[#allocation22_spill] sm:$0xff] %v3189_v45  ;;  %v236_v52 = vsub.f32 %v3183_v40, %v3189_v45  ;;  %v244_v3 = vsub.f32 %v3203_v53, %v3209_v60 }
  0x19   :  { %1163 = vmatpush.msrb.mxu1 %v2967_v5  ;;  %4252 = vst [vmem:[#allocation15_spill] sm:$0xff] %v3108_v4  ;;  %v72_v5 = vsel %vm52_vm0, %v18_v2, 0  ;;  %v3114_v7 = vand.u32 4294901760, %v3108_v4  ;;  %1595 = vmatpush.msrb.mxu3 %v1594_v32  ;;  %v23_v2 = vld [vmem:[%s4138_s0 + $0x58] sm:$0xff] }
  0x1a   :  { %v3116_v8 = vand.u32 4294901760, %v72_v5  ;;  %v3206_v59 = vand.u32 4294901760, %v236_v52  ;;  %4261 = vst [vmem:[#allocation24_spill] sm:$0xff] %v3209_v60 }
  0x1b   :  { %1165 = vmatpush.msrb.mxu1 %v2978_v9  ;;  %4253 = vst [vmem:[#allocation16_spill] sm:$0xff] %v3114_v7  ;;  %v19_v9 = vld [vmem:[%s4138_s0 + $0x38] sm:$0xff]  ;;  %v212_v10 = vsub.f32 %v3108_v4, %v3114_v7 }
  0x1c   :  { %467 = vmatmul.f32.gmra.mxu1 %v3008_v28  ;;  %v3128_v12 = vsub.f32 %v72_v5, %v3116_v8  ;;  %v75_v14 = vsel %vm52_vm0, %v19_v9, 0  ;;  %v3223_v5 = vsub.f32 %v84_v55, %v3211_v62  ;;  %v87_v9 = vsel %vm52_vm0, %v23_v2, 0 }
  0x1d   :  { %1935 = vmatpush.msra.mxu1 %v2981_v11  ;;  %627 = vmatmul.f32.gmra.mxu2 %v3041_v47  ;;  %v3141_v18 = vand.u32 4294901760, %v212_v10  ;;  %v3146_v21 = vand.u32 4294901760, %v75_v14  ;;  %v3226_v10 = vand.u32 4294901760, %v244_v3  ;;  %v93_v55 = vsel %vm52_vm0, %v25_v43, 0 }
  0x1e   :  { %811 = vmatmul.f32.gmra.mxu3 %v3048_v50  ;;  %4254 = vst [vmem:[#allocation17_spill] sm:$0xff] %v3128_v12  ;;  %v3144_v20 = vand.u32 4294901760, %v3128_v12  ;;  %v3229_v13 = vand.u32 4294901760, %v3223_v5  ;;  %v96_v43 = vsel %vm52_vm0, %v26_v24, 0 }
  0x1f   :  { %190 = vmatmul.f32.gmra.mxu0 %v3069_v56  ;;  %1937 = vmatpush.msra.mxu1 %v3134_v15  ;;  %v3163_v29 = vsub.f32 %v75_v14, %v3146_v21  ;;  %4262 = vst [vmem:[#allocation25_spill] sm:$0xff] %v3223_v5  ;;  %v3231_v14 = vand.u32 4294901760, %v87_v9  ;;  %v3291_v26 = vand.u32 4294901760, %v96_v43 }
  0x20   :  { %4255 = vst [vmem:[#allocation18_spill] sm:$0xff] %v3144_v20  ;;  %v220_v27 = vsub.f32 %v3128_v12, %v3144_v20  ;;  %v252_v25 = vsub.f32 %v3223_v5, %v3229_v13 }
  0x21   :  { %4256 = vst [vmem:[#allocation19_spill] sm:$0xff] %v3163_v29  ;;  %v3169_v36 = vand.u32 4294901760, %v3163_v29  ;;  %v3303_v24 = vsub.f32 %v96_v43, %v3291_v26 }
  0x22   :  { %v3166_v33 = vand.u32 4294901760, %v220_v27  ;;  %4263 = vst [vmem:[#allocation26_spill] sm:$0xff] %v3229_v13  ;;  %v3243_v27 = vsub.f32 %v87_v9, %v3231_v14  ;;  %v3246_v32 = vand.u32 4294901760, %v252_v25  ;;  %v3271_v9 = vand.u32 4294901760, %v93_v55 }
  0x23   :  { %4257 = vst [vmem:[#allocation20_spill] sm:$0xff] %v3169_v36  ;;  %v228_v39 = vsub.f32 %v3163_v29, %v3169_v36  ;;  %v3319_v43 = vand.u32 4294901760, %v3303_v24 }
  0x24   :  { %471 = vmatmul.f32.gmra.mxu1 %v3021_v35  ;;  %4264 = vst [vmem:[#allocation27_spill] sm:$0xff] %v3243_v27  ;;  %v3249_v38 = vand.u32 4294901760, %v3243_v27 }
  0x25   :  { %632 = vmatmul.f32.gmra.mxu2 %v3063_v54  ;;  %v3186_v44 = vand.u32 4294901760, %v228_v39  ;;  %v3251_v39 = vand.u32 4294901760, %v90_v31  ;;  %4270 = vst [vmem:[#allocation33_spill] sm:$0xff] %v3303_v24 }
  0x26   :  { %817 = vmatmul.f32.gmra.mxu3 %v3072_v57  ;;  %4265 = vst [vmem:[#allocation28_spill] sm:$0xff] %v3249_v38  ;;  %v260_v48 = vsub.f32 %v3243_v27, %v3249_v38 }
  0x27   :  { %198 = vmatmul.f32.gmra.mxu0 %v3091_v63  ;;  %v3263_v52 = vsub.f32 %v90_v31, %v3251_v39  ;;  %v3283_v31 = vsub.f32 %v93_v55, %v3271_v9  ;;  %4271 = vst [vmem:[#allocation34_spill] sm:$0xff] %v3319_v43 }
  0x28   :  { %v3266_v2 = vand.u32 4294901760, %v260_v48 }
  0x29   :  { %4266 = vst [vmem:[#allocation29_spill] sm:$0xff] %v3263_v52  ;;  %v3269_v3 = vand.u32 4294901760, %v3263_v52  ;;  %v3289_v22 = vand.u32 4294901760, %v3283_v31 }
  0x2a   :  { %4268 = vst [vmem:[#allocation31_spill] sm:$0xff] %v3283_v31 }
  0x2b   :  { %4267 = vst [vmem:[#allocation30_spill] sm:$0xff] %v3269_v3  ;;  %v268_v25 = vsub.f32 %v3263_v52, %v3269_v3  ;;  %v276_v55 = vsub.f32 %v3283_v31, %v3289_v22 }
  0x2c   :  { %475 = vmatmul.f32.gmra.mxu1 %v3050_v51  ;;  %4269 = vst [vmem:[#allocation32_spill] sm:$0xff] %v3289_v22 }
  0x2d   :  { %637 = vmatmul.f32.gmra.mxu2 %v3088_v61  ;;  %v3286_v48 = vand.u32 4294901760, %v268_v25  ;;  %v47_v25 = vld [vmem:[%s4139_s1 + $0x18] sm:$0xff] }
  0x2e   :  { %823 = vmatmul.f32.gmra.mxu3 %v3094_v0 }
  0x2f   :  { %206 = vmatmul.f32.gmra.mxu0 %v3111_v6 }
  0x34   :  { %479 = vmatmul.f32.gmra.mxu1 %v3074_v58 }
  0x35   :  { %642 = vmatmul.f32.gmra.mxu2 %v3108_v4 }
  0x36   :  { %829 = vmatmul.f32.gmra.mxu3 %v3114_v7 }
  0x37   :  { %214 = vmatmul.f32.gmra.mxu0 %v3141_v18 }
  0x3c   :  { %483 = vmatmul.f32.gmra.mxu1 %v3096_v1 }
  0x3d   :  { %647 = vmatmul.f32.gmra.mxu2 %v3128_v12 }
  0x3e   :  { %835 = vmatmul.f32.gmra.mxu3 %v3144_v20 }
  0x3f   :  { %222 = vmatmul.f32.gmra.mxu0 %v3166_v33 }
  0x44   :  { %487 = vmatmul.f32.gmra.mxu1 %v3116_v8 }
  0x45   :  { %652 = vmatmul.f32.gmra.mxu2 %v3163_v29 }
  0x46   :  { %841 = vmatmul.f32.gmra.mxu3 %v3169_v36 }
  0x47   :  { %230 = vmatmul.f32.gmra.mxu0 %v3186_v44 }
  0x4c   :  { %491 = vmatmul.f32.gmra.mxu1 %v3146_v21 }
  0x4d   :  { %657 = vmatmul.f32.gmra.mxu2 %v3183_v40 }
  0x4e   :  { %847 = vmatmul.f32.gmra.mxu3 %v3189_v45 }
  0x4f   :  { %238 = vmatmul.f32.gmra.mxu0 %v3206_v59 }
  0x54   :  { %495 = vmatmul.f32.gmra.mxu1 %v3171_v37 }
  0x55   :  { %662 = vmatmul.f32.gmra.mxu2 %v3203_v53 }
  0x56   :  { %853 = vmatmul.f32.gmra.mxu3 %v3209_v60  ;;  %v284_v60 = vsub.f32 %v3303_v24, %v3319_v43 }
  0x57   :  { %246 = vmatmul.f32.gmra.mxu0 %v3226_v10 }
  0x58   :  { %v3341_v36 = vand.u32 4294901760, %v284_v60 }
  0x5c   :  { %499 = vmatmul.f32.gmra.mxu1 %v3191_v46 }
  0x5d   :  { %667 = vmatmul.f32.gmra.mxu2 %v3223_v5 }
  0x5e   :  { %859 = vmatmul.f32.gmra.mxu3 %v3229_v13  ;;  %v3309_v13 = vand.u32 4294901760, %v47_v25 }
  0x5f   :  { %254 = vmatmul.f32.gmra.mxu0 %v3246_v32 }
  0x60   :  { %1312 = vmatpush.msrb.mxu2 %v3309_v13  ;;  %1939 = vmatpush.msra.mxu1 %v3309_v13 }
  0x64   :  { %503 = vmatmul.f32.gmra.mxu1 %v3211_v62 }
  0x65   :  { %672 = vmatmul.f32.gmra.mxu2 %v3243_v27 }
  0x66   :  { %865 = vmatmul.f32.gmra.mxu3 %v3249_v38  ;;  %v27_v38 = vld [vmem:[%s4138_s0 + $0x78] sm:$0xff] }
  0x67   :  { %262 = vmatmul.f32.gmra.mxu0 %v3266_v2  ;;  %v99_v27 = vsel %vm52_vm0, %v27_v38, 0 }
  0x68   :  { %v3321_v5 = vand.u32 4294901760, %v99_v27 }
  0x6a   :  { %v3338_v53 = vsub.f32 %v99_v27, %v3321_v5 }
  0x6c   :  { %507 = vmatmul.f32.gmra.mxu1 %v3231_v14  ;;  %4272 = vst [vmem:[#allocation35_spill] sm:$0xff] %v3338_v53 }
  0x6d   :  { %677 = vmatmul.f32.gmra.mxu2 %v3263_v52  ;;  %v3316_v52 = vand.u32 4294901760, %v276_v55 }
  0x6e   :  { %871 = vmatmul.f32.gmra.mxu3 %v3269_v3  ;;  %v3313_v3 = vsub.f32 %v47_v25, %v3309_v13  ;;  %v28_v25 = vld [vmem:[%s4138_s0 + $0x80] sm:$0xff] }
  0x6f   :  { %270 = vmatmul.f32.gmra.mxu0 %v3286_v48  ;;  %v102_v45 = vsel %vm52_vm0, %v28_v25, 0 }
  0x70   :  { %v4156_v38 = vand.u32 4294901760, %v3313_v3  ;;  %1757 = vmatpush.msra.mxu0 %v3313_v3 }
  0x72   :  { %v1599_v55 = vsub.f32 %v3313_v3, %v4156_v38  ;;  %v29_v38 = vld [vmem:[%s4138_s0 + $0x88] sm:$0xff] }
  0x73   :  { %v105_v27 = vsel %vm52_vm0, %v29_v38, 0 }
  0x74   :  { %511 = vmatmul.f32.gmra.mxu1 %v3251_v39  ;;  %v1600_v40 = vand.u32 4294901760, %v1599_v55  ;;  %v3366_v29 = vand.u32 4294901760, %v105_v27 }
  0x75   :  { %682 = vmatmul.f32.gmra.mxu2 %v3283_v31  ;;  %v3346_v31 = vand.u32 4294901760, %v102_v45 }
  0x76   :  { %877 = vmatmul.f32.gmra.mxu3 %v3289_v22  ;;  %v3344_v22 = vand.u32 4294901760, %v3338_v53  ;;  %4277 = vst [vmem:[#allocation40_spill] sm:$0xff] %v3366_v29  ;;  %v3378_v38 = vsub.f32 %v105_v27, %v3366_v29 }
  0x77   :  { %278 = vmatmul.f32.gmra.mxu0 %v3316_v52  ;;  %1601 = vmatpush.msrb.mxu3 %v1600_v40  ;;  %4274 = vst [vmem:[#allocation37_spill] sm:$0xff] %v3346_v31  ;;  %v3358_v60 = vsub.f32 %v102_v45, %v3346_v31 }
  0x78   :  { %4273 = vst [vmem:[#allocation36_spill] sm:$0xff] %v3344_v22  ;;  %v292_v40 = vsub.f32 %v3338_v53, %v3344_v22  ;;  %v3384_v20 = vand.u32 4294901760, %v3378_v38 }
  0x79   :  { %4275 = vst [vmem:[#allocation38_spill] sm:$0xff] %v3358_v60  ;;  %v3364_v55 = vand.u32 4294901760, %v3358_v60 }
  0x7a   :  { %v3361_v25 = vand.u32 4294901760, %v292_v40  ;;  %4278 = vst [vmem:[#allocation41_spill] sm:$0xff] %v3378_v38 }
  0x7b   :  { %4276 = vst [vmem:[#allocation39_spill] sm:$0xff] %v3364_v55  ;;  %v300_v45 = vsub.f32 %v3358_v60, %v3364_v55 }
  0x7c   :  { %515 = vmatmul.f32.gmra.mxu1 %v3271_v9  ;;  %4279 = vst [vmem:[#allocation42_spill] sm:$0xff] %v3384_v20 }
  0x7d   :  { %687 = vmatmul.f32.gmra.mxu2 %v3303_v24  ;;  %v3381_v24 = vand.u32 4294901760, %v300_v45 }
  0x7e   :  { %883 = vmatmul.f32.gmra.mxu3 %v3319_v43  ;;  %v30_v43 = vld [vmem:[%s4138_s0 + $0x90] sm:$0xff] }
  0x7f   :  { %286 = vmatmul.f32.gmra.mxu0 %v3341_v36  ;;  %v108_v40 = vsel %vm52_vm0, %v30_v43, 0  ;;  %v308_v43 = vsub.f32 %v3378_v38, %v3384_v20 }
  0x80   :  { %v3386_v12 = vand.u32 4294901760, %v108_v40 }
  0x81   :  { %v3401_v57 = vand.u32 4294901760, %v308_v43 }
  0x82   :  { %4280 = vst [vmem:[#allocation43_spill] sm:$0xff] %v3386_v12  ;;  %v3398_v27 = vsub.f32 %v108_v40, %v3386_v12  ;;  %v32_v40 = vld [vmem:[%s4138_s0 + $0xa0] sm:$0xff] }
  0x83   :  { %4282 = vst [vmem:[#allocation45_spill] sm:$0xff] %v3401_v57 }
  0x84   :  { %519 = vmatmul.f32.gmra.mxu1 %v3291_v26  ;;  %4281 = vst [vmem:[#allocation44_spill] sm:$0xff] %v3398_v27 }
  0x85   :  { %692 = vmatmul.f32.gmra.mxu2 %v3338_v53 }
  0x86   :  { %889 = vmatmul.f32.gmra.mxu3 %v3344_v22  ;;  %v31_v22 = vld [vmem:[%s4138_s0 + $0x98] sm:$0xff] }
  0x87   :  { %294 = vmatmul.f32.gmra.mxu0 %v3361_v25  ;;  %v111_v45 = vsel %vm52_vm0, %v31_v22, 0 }
  0x8c   :  { %v175_v53 = vpop.f32.mrf.mxu0  ;;  %523 = vmatmul.f32.gmra.mxu1 %v3321_v5 }
  0x8d   :  { %697 = vmatmul.f32.gmra.mxu2 %v3358_v60  ;;  %v3404_v60 = vand.u32 4294901760, %v3398_v27 }
  0x8e   :  { %895 = vmatmul.f32.gmra.mxu3 %v3364_v55  ;;  %v3406_v55 = vand.u32 4294901760, %v111_v45 }
  0x8f   :  { %302 = vmatmul.f32.gmra.mxu0 %v3381_v24  ;;  %4283 = vst [vmem:[#allocation46_spill] sm:$0xff] %v3404_v60 }
  0x90   :  { %v618_v4 = vpop.f32.mrf.mxu2  ;;  %4284 = vst [vmem:[#allocation47_spill] sm:$0xff] %v3406_v55 }
  0x91   :  { %v464_v7 = vpop.f32.mrf.mxu1  ;;  %v800_v61 = vpop.f32.mrf.mxu3 }
  0x92   :  { %v465_v0 = vadd.f32 %v464_v7, %v175_v53  ;;  %v316_v7 = vsub.f32 %v3398_v27, %v3404_v60  ;;  %v3420_v53 = vsub.f32 %v111_v45, %v3406_v55  ;;  %v33_v45 = vld [vmem:[%s4138_s0 + $0xa8] sm:$0xff] }
  0x94   :  { %v183_v54 = vpop.f32.mrf.mxu0  ;;  %v619_v50 = vadd.f32 %v618_v4, %v465_v0  ;;  %527 = vmatmul.f32.gmra.mxu1 %v3346_v31  ;;  %4285 = vst [vmem:[#allocation48_spill] sm:$0xff] %v3420_v53  ;;  %v114_v0 = vsel %vm52_vm0, %v32_v40, 0 }
  0x95   :  { %702 = vmatmul.f32.gmra.mxu2 %v3378_v38 }
  0x96   :  { %v3412_v22 = vadd.f32 %v800_v61, %v619_v50  ;;  %901 = vmatmul.f32.gmra.mxu3 %v3384_v20  ;;  %v3423_v50 = vand.u32 4294901760, %v316_v7  ;;  %v3426_v61 = vand.u32 4294901760, %v3420_v53  ;;  %v3428_v20 = vand.u32 4294901760, %v114_v0 }
  0x97   :  { %310 = vmatmul.f32.gmra.mxu0 %v3401_v57 }
  0x98   :  { %v623_v43 = vpop.f32.mrf.mxu2  ;;  %4286 = vst [vmem:[#allocation49_spill] sm:$0xff] %v3423_v50  ;;  %v3442_v7 = vsub.f32 %v114_v0, %v3428_v20  ;;  %v34_v0 = vld [vmem:[%s4138_s0 + $0xb0] sm:$0xff] }
  0x99   :  { %v468_v4 = vpop.f32.mrf.mxu1  ;;  %v806_v41 = vpop.f32.mrf.mxu3  ;;  %4287 = vst [vmem:[#allocation50_spill] sm:$0xff] %v3426_v61 }
  0x9a   :  { %v469_v47 = vadd.f32 %v468_v4, %v183_v54  ;;  %v324_v54 = vsub.f32 %v3420_v53, %v3426_v61  ;;  %4289 = vst [vmem:[#allocation52_spill] sm:$0xff] %v3442_v7 }
  0x9c   :  { %v191_v38 = vpop.f32.mrf.mxu0  ;;  %v624_v34 = vadd.f32 %v623_v43, %v469_v47  ;;  %531 = vmatmul.f32.gmra.mxu1 %v3366_v29  ;;  %v117_v47 = vsel %vm52_vm0, %v33_v45, 0 }
  0x9d   :  { %707 = vmatmul.f32.gmra.mxu2 %v3398_v27 }
  0x9e   :  { %v3434_v40 = vadd.f32 %v806_v41, %v624_v34  ;;  %907 = vmatmul.f32.gmra.mxu3 %v3404_v60  ;;  %v3445_v34 = vand.u32 4294901760, %v324_v54  ;;  %v3448_v41 = vand.u32 4294901760, %v3442_v7  ;;  %v3450_v60 = vand.u32 4294901760, %v117_v47 }
  0x9f   :  { %318 = vmatmul.f32.gmra.mxu0 %v3423_v50 }
  0xa0   :  { %4288 = vst [vmem:[#allocation51_spill] sm:$0xff] %v3434_v40  ;;  %v628_v43 = vpop.f32.mrf.mxu2  ;;  %v3464_v54 = vsub.f32 %v117_v47, %v3450_v60  ;;  %v35_v47 = vld [vmem:[%s4138_s0 + $0xb8] sm:$0xff] }
  0xa1   :  { %v472_v4 = vpop.f32.mrf.mxu1  ;;  %v812_v23 = vpop.f32.mrf.mxu3  ;;  %4290 = vst [vmem:[#allocation53_spill] sm:$0xff] %v3445_v34 }
  0xa2   :  { %v473_v30 = vadd.f32 %v472_v4, %v191_v38  ;;  %4291 = vst [vmem:[#allocation54_spill] sm:$0xff] %v3448_v41  ;;  %v332_v38 = vsub.f32 %v3442_v7, %v3448_v41 }
  0xa3   :  { %4293 = vst [vmem:[#allocation56_spill] sm:$0xff] %v3464_v54 }
  0xa4   :  { %v199_v27 = vpop.f32.mrf.mxu0  ;;  %v629_v50 = vadd.f32 %v628_v43, %v473_v30  ;;  %535 = vmatmul.f32.gmra.mxu1 %v3386_v12  ;;  %v120_v30 = vsel %vm52_vm0, %v34_v0, 0 }
  0xa5   :  { %712 = vmatmul.f32.gmra.mxu2 %v3420_v53 }
  0xa6   :  { %v3456_v45 = vadd.f32 %v812_v23, %v629_v50  ;;  %913 = vmatmul.f32.gmra.mxu3 %v3426_v61  ;;  %v3467_v23 = vand.u32 4294901760, %v332_v38  ;;  %v3470_v50 = vand.u32 4294901760, %v3464_v54  ;;  %v3472_v61 = vand.u32 4294901760, %v120_v30 }
  0xa7   :  { %326 = vmatmul.f32.gmra.mxu0 %v3445_v34 }
  0xa8   :  { %4292 = vst [vmem:[#allocation55_spill] sm:$0xff] %v3456_v45  ;;  %v633_v43 = vpop.f32.mrf.mxu2  ;;  %v3486_v38 = vsub.f32 %v120_v30, %v3472_v61  ;;  %v4301_v45 = vand.u32 4294901760, %v2998_v19 }
  0xa9   :  { %v476_v4 = vpop.f32.mrf.mxu1  ;;  %v818_v40 = vpop.f32.mrf.mxu3  ;;  %4294 = vst [vmem:[#allocation57_spill] sm:$0xff] %v3467_v23 }
  0xaa   :  { %v477_v12 = vadd.f32 %v476_v4, %v199_v27  ;;  %4295 = vst [vmem:[#allocation58_spill] sm:$0xff] %v3470_v50  ;;  %v340_v27 = vsub.f32 %v3464_v54, %v3470_v50  ;;  %v123_v4 = vsel %vm52_vm0, %v35_v47, 0 }
  0xab   :  { %4297 = vst [vmem:[#allocation60_spill] sm:$0xff] %v3486_v38  ;;  %v3497_v30 = vand.u32 4294901760, %v123_v4 }
  0xac   :  { %v207_v53 = vpop.f32.mrf.mxu0  ;;  %v634_v34 = vadd.f32 %v633_v43, %v477_v12  ;;  %539 = vmatmul.f32.gmra.mxu1 %v3406_v55  ;;  %v45_v12 = vld [vmem:[%s4139_s1 + $0x8] sm:$0xff]  ;;  %v3495_v55 = vand.u32 4294901760, %v3486_v38 }
  0xad   :  { %717 = vmatmul.f32.gmra.mxu2 %v3442_v7  ;;  %4300 = vst [vmem:[#allocation63_spill] sm:$0xff] %v3497_v30 }
  0xae   :  { %v3478_v0 = vadd.f32 %v818_v40, %v634_v34  ;;  %919 = vmatmul.f32.gmra.mxu3 %v3448_v41  ;;  %v1313_v40 = vand.u32 4294901760, %v45_v12  ;;  %4299 = vst [vmem:[#allocation62_spill] sm:$0xff] %v3495_v55 }
  0xaf   :  { %334 = vmatmul.f32.gmra.mxu0 %v3467_v23  ;;  %v3492_v23 = vand.u32 4294901760, %v340_v27  ;;  %v4302_v27 = vand.u32 4294901760, %v3138_v16 }
  0xb0   :  { %4296 = vst [vmem:[#allocation59_spill] sm:$0xff] %v3478_v0  ;;  %v638_v43 = vpop.f32.mrf.mxu2  ;;  %1314 = vmatpush.msrb.mxu2 %v1313_v40  ;;  %v1603_v41 = vsub.f32 %v45_v12, %v1313_v40  ;;  %1941 = vmatpush.msra.mxu1 %v1313_v40 }
  0xb1   :  { %v480_v34 = vpop.f32.mrf.mxu1  ;;  %v824_v0 = vpop.f32.mrf.mxu3  ;;  %4298 = vst [vmem:[#allocation61_spill] sm:$0xff] %v3492_v23 }
  0xb2   :  { %v481_v7 = vadd.f32 %v480_v34, %v207_v53  ;;  %2150 = vmatpush.msra.mxu2 %v4301_v45  ;;  %v1604_v57 = vand.u32 4294901760, %v1603_v41  ;;  %1760 = vmatpush.msra.mxu0 %v1603_v41  ;;  %v36_v53 = vld [vmem:[%s4138_s0 + $0xc0] sm:$0xff]  ;;  %v3515_v45 = vsub.f32 %v123_v4, %v3497_v30  ;;  %v4304_v34 = vand.u32 4294901760, %v3313_v3 }
  0xb3   :  { %v126_v16 = vsel %vm52_vm0, %v36_v53, 0 }
  0xb4   :  { %v215_v29 = vpop.f32.mrf.mxu0  ;;  %v639_v47 = vadd.f32 %v638_v43, %v481_v7  ;;  %543 = vmatmul.f32.gmra.mxu1 %v3428_v20  ;;  %2154 = vmatpush.msra.mxu2 %v4302_v27  ;;  %v1605_v19 = vsub.f32 %v1603_v41, %v1604_v57  ;;  %v348_v7 = vsub.f32 %v3486_v38, %v3495_v55 }
  0xb5   :  { %722 = vmatmul.f32.gmra.mxu2 %v3464_v54  ;;  %4303 = vst [vmem:[#allocation64_spill] sm:$0xff] %v3515_v45  ;;  %v3523_v54 = vand.u32 4294901760, %v3515_v45 }
  0xb6   :  { %v3507_v12 = vadd.f32 %v824_v0, %v639_v47  ;;  %925 = vmatmul.f32.gmra.mxu3 %v3470_v50  ;;  %2158 = vmatpush.msra.mxu2 %v4304_v34  ;;  %v1606_v0 = vand.u32 4294901760, %v1605_v19  ;;  %v3520_v41 = vand.u32 4294901760, %v348_v7 }
  0xb7   :  { %342 = vmatmul.f32.gmra.mxu0 %v3492_v23  ;;  %4305 = vst [vmem:[#allocation65_spill] sm:$0xff] %v3523_v54  ;;  %v3525_v23 = vand.u32 4294901760, %v126_v16 }
  0xb8   :  { %v643_v47 = vpop.f32.mrf.mxu2  ;;  %2162 = vmatpush.msra.mxu2 %v1604_v57  ;;  %1607 = vmatpush.msrb.mxu3 %v1606_v0  ;;  %v37_v57 = vld [vmem:[%s4138_s0 + $0xc8] sm:$0xff] }
  0xb9   :  { %v484_v43 = vpop.f32.mrf.mxu1  ;;  %v830_v50 = vpop.f32.mrf.mxu3  ;;  %4306 = vst [vmem:[#allocation66_spill] sm:$0xff] %v3525_v23  ;;  %v3541_v53 = vsub.f32 %v126_v16, %v3525_v23  ;;  %v129_v19 = vsel %vm52_vm0, %v37_v57, 0 }
  0xba   :  { %v485_v27 = vadd.f32 %v484_v43, %v215_v29  ;;  %2305 = vmatpush.msra.mxu3 %v2981_v11  ;;  %v356_v11 = vsub.f32 %v3515_v45, %v3523_v54 }
  0xbb   :  { %4307 = vst [vmem:[#allocation67_spill] sm:$0xff] %v3541_v53  ;;  %v3548_v43 = vand.u32 4294901760, %v3541_v53 }
  0xbc   :  { %v223_v3 = vpop.f32.mrf.mxu0  ;;  %v644_v4 = vadd.f32 %v643_v47, %v485_v27  ;;  %547 = vmatmul.f32.gmra.mxu1 %v3450_v60  ;;  %2307 = vmatpush.msra.mxu3 %v3134_v15  ;;  %v3545_v0 = vand.u32 4294901760, %v356_v11  ;;  %v3550_v47 = vand.u32 4294901760, %v129_v19 }
  0xbd   :  { %727 = vmatmul.f32.gmra.mxu2 %v3486_v38  ;;  %4308 = vst [vmem:[#allocation68_spill] sm:$0xff] %v3548_v43 }
  0xbe   :  { %v3533_v29 = vadd.f32 %v830_v50, %v644_v4  ;;  %931 = vmatmul.f32.gmra.mxu3 %v3495_v55  ;;  %4309 = vst [vmem:[#allocation69_spill] sm:$0xff] %v3550_v47 }
  0xbf   :  { %350 = vmatmul.f32.gmra.mxu0 %v3520_v41  ;;  %2309 = vmatpush.msra.mxu3 %v3309_v13  ;;  %v38_v13 = vld [vmem:[%s4138_s0 + $0xd0] sm:$0xff] }
  0xc0   :  { %v648_v15 = vpop.f32.mrf.mxu2  ;;  %v132_v57 = vsel %vm52_vm0, %v38_v13, 0 }
  0xc1   :  { %v488_v7 = vpop.f32.mrf.mxu1  ;;  %2311 = vmatpush.msra.mxu3 %v1313_v40  ;;  %v836_v34 = vpop.f32.mrf.mxu3  ;;  %v364_v40 = vsub.f32 %v3541_v53, %v3548_v43 }
  0xc2   :  { %v489_v50 = vadd.f32 %v488_v7, %v223_v3  ;;  %v3564_v3 = vsub.f32 %v129_v19, %v3550_v47  ;;  %v39_v19 = vld [vmem:[%s4138_s0 + $0xd8] sm:$0xff] }
  0xc4   :  { %v231_v27 = vpop.f32.mrf.mxu0  ;;  %v649_v4 = vadd.f32 %v648_v15, %v489_v50  ;;  %551 = vmatmul.f32.gmra.mxu1 %v3472_v61  ;;  %4310 = vst [vmem:[#allocation70_spill] sm:$0xff] %v3564_v3 }
  0xc5   :  { %732 = vmatmul.f32.gmra.mxu2 %v3515_v45 }
  0xc6   :  { %v3556_v16 = vadd.f32 %v836_v34, %v649_v4  ;;  %937 = vmatmul.f32.gmra.mxu3 %v3523_v54  ;;  %v3567_v34 = vand.u32 4294901760, %v364_v40  ;;  %v3570_v4 = vand.u32 4294901760, %v3564_v3  ;;  %v3572_v54 = vand.u32 4294901760, %v132_v57 }
  0xc7   :  { %358 = vmatmul.f32.gmra.mxu0 %v3545_v0 }
  0xc8   :  { %v653_v7 = vpop.f32.mrf.mxu2  ;;  %4311 = vst [vmem:[#allocation71_spill] sm:$0xff] %v3567_v34  ;;  %v3586_v40 = vsub.f32 %v132_v57, %v3572_v54  ;;  %v40_v57 = vld [vmem:[%s4138_s0 + $0xe0] sm:$0xff] }
  0xc9   :  { %v492_v11 = vpop.f32.mrf.mxu1  ;;  %v842_v50 = vpop.f32.mrf.mxu3  ;;  %4312 = vst [vmem:[#allocation72_spill] sm:$0xff] %v3570_v4 }
  0xca   :  { %v493_v15 = vadd.f32 %v492_v11, %v231_v27  ;;  %4313 = vst [vmem:[#allocation73_spill] sm:$0xff] %v3572_v54  ;;  %v372_v27 = vsub.f32 %v3564_v3, %v3570_v4  ;;  %v135_v11 = vsel %vm52_vm0, %v39_v19, 0 }
  0xcb   :  { %4315 = vst [vmem:[#allocation75_spill] sm:$0xff] %v3586_v40 }
  0xcc   :  { %v239_v45 = vpop.f32.mrf.mxu0  ;;  %v654_v55 = vadd.f32 %v653_v7, %v493_v15  ;;  %555 = vmatmul.f32.gmra.mxu1 %v3497_v30 }
  0xcd   :  { %737 = vmatmul.f32.gmra.mxu2 %v3541_v53 }
  0xce   :  { %v3578_v13 = vadd.f32 %v842_v50, %v654_v55  ;;  %943 = vmatmul.f32.gmra.mxu3 %v3548_v43  ;;  %v3589_v55 = vand.u32 4294901760, %v372_v27  ;;  %v3592_v50 = vand.u32 4294901760, %v3586_v40  ;;  %v3594_v43 = vand.u32 4294901760, %v135_v11 }
  0xcf   :  { %366 = vmatmul.f32.gmra.mxu0 %v3567_v34 }
  0xd0   :  { %4314 = vst [vmem:[#allocation74_spill] sm:$0xff] %v3578_v13  ;;  %v658_v15 = vpop.f32.mrf.mxu2  ;;  %v3608_v27 = vsub.f32 %v135_v11, %v3594_v43  ;;  %v41_v11 = vld [vmem:[%s4138_s0 + $0xe8] sm:$0xff] }
  0xd1   :  { %v496_v7 = vpop.f32.mrf.mxu1  ;;  %v848_v30 = vpop.f32.mrf.mxu3  ;;  %4316 = vst [vmem:[#allocation76_spill] sm:$0xff] %v3589_v55 }
  0xd2   :  { %v497_v38 = vadd.f32 %v496_v7, %v239_v45  ;;  %4317 = vst [vmem:[#allocation77_spill] sm:$0xff] %v3592_v50  ;;  %v380_v45 = vsub.f32 %v3586_v40, %v3592_v50 }
  0xd3   :  { %4318 = vst [vmem:[#allocation78_spill] sm:$0xff] %v3594_v43 }
  0xd4   :  { %v247_v53 = vpop.f32.mrf.mxu0  ;;  %v659_v34 = vadd.f32 %v658_v15, %v497_v38  ;;  %559 = vmatmul.f32.gmra.mxu1 %v3525_v23  ;;  %4320 = vst [vmem:[#allocation80_spill] sm:$0xff] %v3608_v27  ;;  %v138_v38 = vsel %vm52_vm0, %v40_v57, 0 }
  0xd5   :  { %742 = vmatmul.f32.gmra.mxu2 %v3564_v3 }
  0xd6   :  { %v3600_v19 = vadd.f32 %v848_v30, %v659_v34  ;;  %949 = vmatmul.f32.gmra.mxu3 %v3570_v4  ;;  %v3611_v30 = vand.u32 4294901760, %v380_v45  ;;  %v3614_v34 = vand.u32 4294901760, %v3608_v27  ;;  %v3616_v4 = vand.u32 4294901760, %v138_v38 }
  0xd7   :  { %374 = vmatmul.f32.gmra.mxu0 %v3589_v55 }
  0xd8   :  { %4319 = vst [vmem:[#allocation79_spill] sm:$0xff] %v3600_v19  ;;  %v663_v15 = vpop.f32.mrf.mxu2  ;;  %v3630_v45 = vsub.f32 %v138_v38, %v3616_v4  ;;  %v42_v38 = vld [vmem:[%s4138_s0 + $0xf0] sm:$0xff] }
  0xd9   :  { %v500_v7 = vpop.f32.mrf.mxu1  ;;  %v854_v13 = vpop.f32.mrf.mxu3  ;;  %4321 = vst [vmem:[#allocation81_spill] sm:$0xff] %v3611_v30 }
  0xda   :  { %v501_v23 = vadd.f32 %v500_v7, %v247_v53  ;;  %4322 = vst [vmem:[#allocation82_spill] sm:$0xff] %v3614_v34  ;;  %v388_v53 = vsub.f32 %v3608_v27, %v3614_v34 }
  0xdb   :  { %4324 = vst [vmem:[#allocation84_spill] sm:$0xff] %v3630_v45 }
  0xdc   :  { %v255_v3 = vpop.f32.mrf.mxu0  ;;  %v664_v55 = vadd.f32 %v663_v15, %v501_v23  ;;  %563 = vmatmul.f32.gmra.mxu1 %v3550_v47  ;;  %v141_v23 = vsel %vm52_vm0, %v41_v11, 0 }
  0xdd   :  { %747 = vmatmul.f32.gmra.mxu2 %v3586_v40 }
  0xde   :  { %v3622_v57 = vadd.f32 %v854_v13, %v664_v55  ;;  %955 = vmatmul.f32.gmra.mxu3 %v3592_v50  ;;  %v3633_v13 = vand.u32 4294901760, %v388_v53  ;;  %v3636_v55 = vand.u32 4294901760, %v3630_v45  ;;  %v3638_v50 = vand.u32 4294901760, %v141_v23 }
  0xdf   :  { %382 = vmatmul.f32.gmra.mxu0 %v3611_v30 }
  0xe0   :  { %4323 = vst [vmem:[#allocation83_spill] sm:$0xff] %v3622_v57  ;;  %v668_v15 = vpop.f32.mrf.mxu2  ;;  %v3652_v53 = vsub.f32 %v141_v23, %v3638_v50  ;;  %v43_v23 = vld [vmem:[%s4138_s0 + $0xf8] sm:$0xff]  ;;  %s2936_s0 = smov [#allocation2]  }
  0xe1   :  { %v504_v7 = vpop.f32.mrf.mxu1  ;;  %v860_v19 = vpop.f32.mrf.mxu3  ;;  %4325 = vst [vmem:[#allocation85_spill] sm:$0xff] %v3633_v13  ;;  %s2765_s4 = sshll.u32 %s2936_s0, 4  ;;  %s2766_s4 = int_to_ptr.vmem [resolvable:$true] %s2765_s4 }
  0xe2   :  { %v505_v47 = vadd.f32 %v504_v7, %v255_v3  ;;  %4326 = vst [vmem:[#allocation86_spill] sm:$0xff] %v3636_v55  ;;  %v396_v3 = vsub.f32 %v3630_v45, %v3636_v55 }
  0xe3   :  { %4328 = vst [vmem:[#allocation88_spill] sm:$0xff] %v3652_v53 }
  0xe4   :  { %v263_v40 = vpop.f32.mrf.mxu0  ;;  %v669_v30 = vadd.f32 %v668_v15, %v505_v47  ;;  %567 = vmatmul.f32.gmra.mxu1 %v3572_v54  ;;  %v144_v47 = vsel %vm52_vm0, %v42_v38, 0 }
  0xe5   :  { %752 = vmatmul.f32.gmra.mxu2 %v3608_v27 }
  0xe6   :  { %v3644_v11 = vadd.f32 %v860_v19, %v669_v30  ;;  %961 = vmatmul.f32.gmra.mxu3 %v3614_v34  ;;  %v3655_v19 = vand.u32 4294901760, %v396_v3  ;;  %v3658_v30 = vand.u32 4294901760, %v3652_v53  ;;  %v3660_v34 = vand.u32 4294901760, %v144_v47 }
  0xe7   :  { %390 = vmatmul.f32.gmra.mxu0 %v3633_v13 }
  0xe8   :  { %4327 = vst [vmem:[#allocation87_spill] sm:$0xff] %v3644_v11  ;;  %v673_v15 = vpop.f32.mrf.mxu2  ;;  %v3674_v3 = vsub.f32 %v144_v47, %v3660_v34 }
  0xe9   :  { %v508_v7 = vpop.f32.mrf.mxu1  ;;  %v866_v57 = vpop.f32.mrf.mxu3  ;;  %4329 = vst [vmem:[#allocation89_spill] sm:$0xff] %v3655_v19 }
  0xea   :  { %v509_v54 = vadd.f32 %v508_v7, %v263_v40  ;;  %4330 = vst [vmem:[#allocation90_spill] sm:$0xff] %v3658_v30  ;;  %v404_v40 = vsub.f32 %v3652_v53, %v3658_v30 }
  0xeb   :  { %4332 = vst [vmem:[#allocation92_spill] sm:$0xff] %v3674_v3 }
  0xec   :  { %v271_v27 = vpop.f32.mrf.mxu0  ;;  %v674_v13 = vadd.f32 %v673_v15, %v509_v54  ;;  %571 = vmatmul.f32.gmra.mxu1 %v3594_v43  ;;  %v147_v54 = vsel %vm52_vm0, %v43_v23, 0 }
  0xed   :  { %757 = vmatmul.f32.gmra.mxu2 %v3630_v45 }
  0xee   :  { %v3666_v38 = vadd.f32 %v866_v57, %v674_v13  ;;  %967 = vmatmul.f32.gmra.mxu3 %v3636_v55  ;;  %v3677_v57 = vand.u32 4294901760, %v404_v40  ;;  %v3680_v13 = vand.u32 4294901760, %v3674_v3  ;;  %v3682_v55 = vand.u32 4294901760, %v147_v54 }
  0xef   :  { %398 = vmatmul.f32.gmra.mxu0 %v3655_v19 }
  0xf0   :  { %4331 = vst [vmem:[#allocation91_spill] sm:$0xff] %v3666_v38  ;;  %v678_v15 = vpop.f32.mrf.mxu2  ;;  %v3693_v47 = vsub.f32 %v147_v54, %v3682_v55 }
  0xf1   :  { %v512_v7 = vpop.f32.mrf.mxu1  ;;  %v872_v11 = vpop.f32.mrf.mxu3  ;;  %4333 = vst [vmem:[#allocation93_spill] sm:$0xff] %v3677_v57 }
  0xf2   :  { %v513_v43 = vadd.f32 %v512_v7, %v271_v27  ;;  %4334 = vst [vmem:[#allocation94_spill] sm:$0xff] %v3680_v13  ;;  %v412_v27 = vsub.f32 %v3674_v3, %v3680_v13 }
  0xf3   :  { %4336 = vst [vmem:[#allocation96_spill] sm:$0xff] %v3693_v47 }
  0xf4   :  { %v279_v45 = vpop.f32.mrf.mxu0  ;;  %v679_v19 = vadd.f32 %v678_v15, %v513_v43  ;;  %575 = vmatmul.f32.gmra.mxu1 %v3616_v4  ;;  %v3695_v15 = vand.u32 4294901760, %v412_v27 }
  0xf5   :  { %762 = vmatmul.f32.gmra.mxu2 %v3652_v53 }
  0xf6   :  { %v3685_v38 = vadd.f32 %v872_v11, %v679_v19  ;;  %973 = vmatmul.f32.gmra.mxu3 %v3658_v30  ;;  %4337 = vst [vmem:[#allocation97_spill] sm:$0xff] %v3695_v15  ;;  %v3698_v11 = vand.u32 4294901760, %v3693_v47 }
  0xf7   :  { %406 = vmatmul.f32.gmra.mxu0 %v3677_v57 }
  0xf8   :  { %4335 = vst [vmem:[#allocation95_spill] sm:$0xff] %v3685_v38  ;;  %v683_v40 = vpop.f32.mrf.mxu2 }
  0xf9   :  { %v516_v23 = vpop.f32.mrf.mxu1  ;;  %v878_v43 = vpop.f32.mrf.mxu3  ;;  %4338 = vst [vmem:[#allocation98_spill] sm:$0xff] %v3698_v11 }
  0xfa   :  { %v517_v7 = vadd.f32 %v516_v23, %v279_v45  ;;  %v420_v45 = vsub.f32 %v3693_v47, %v3698_v11 }
  0xfc   :  { %v287_v19 = vpop.f32.mrf.mxu0  ;;  %v684_v53 = vadd.f32 %v683_v40, %v517_v7  ;;  %579 = vmatmul.f32.gmra.mxu1 %v3638_v50  ;;  %v3708_v38 = vand.u32 4294901760, %v420_v45 }
  0xfd   :  { %767 = vmatmul.f32.gmra.mxu2 %v3674_v3 }
  0xfe   :  { %v3701_v30 = vadd.f32 %v878_v43, %v684_v53  ;;  %979 = vmatmul.f32.gmra.mxu3 %v3680_v13 }
  0xff   :  { %414 = vmatmul.f32.gmra.mxu0 %v3695_v15 }
 0x100   :  { %v688_v27 = vpop.f32.mrf.mxu2 }
 0x101   :  { %v520_v54 = vpop.f32.mrf.mxu1  ;;  %v884_v57 = vpop.f32.mrf.mxu3 }
 0x102   :  { %v521_v23 = vadd.f32 %v520_v54, %v287_v19 }
 0x104   :  { %v295_v40 = vpop.f32.mrf.mxu0  ;;  %v689_v7 = vadd.f32 %v688_v27, %v521_v23  ;;  %583 = vmatmul.f32.gmra.mxu1 %v3660_v34 }
 0x105   :  { %772 = vmatmul.f32.gmra.mxu2 %v3693_v47 }
 0x106   :  { %v3711_v53 = vadd.f32 %v884_v57, %v689_v7  ;;  %985 = vmatmul.f32.gmra.mxu3 %v3698_v11 }
 0x107   :  { %422 = vmatmul.f32.gmra.mxu0 %v3708_v38 }
 0x108   :  { %v693_v13 = vpop.f32.mrf.mxu2 }
 0x109   :  { %v524_v43 = vpop.f32.mrf.mxu1  ;;  %v890_v15 = vpop.f32.mrf.mxu3 }
 0x10a   :  { %v525_v3 = vadd.f32 %v524_v43, %v295_v40 }
 0x10c   :  { %v303_v19 = vpop.f32.mrf.mxu0  ;;  %v694_v54 = vadd.f32 %v693_v13, %v525_v3  ;;  %587 = vmatmul.f32.gmra.mxu1 %v3682_v55 }
 0x10d   :  { %1320 = vmatmul.f32.vlgmr.msrb.gmra.mxu2 %v3030_v42 }
 0x10e   :  { %v3717_v45 = vadd.f32 %v890_v15, %v694_v54  ;;  %1609 = vmatmul.f32.vlgmr.msrb.gmra.mxu3 %v2994_v17 }
 0x10f   :  { %1018 = vmatmul.f32.vlgmr.msrb.gmra.mxu0 %v2994_v17 }
 0x110   :  { %v698_v27 = vpop.f32.mrf.mxu2 }
 0x111   :  { %v528_v57 = vpop.f32.mrf.mxu1  ;;  %v896_v7 = vpop.f32.mrf.mxu3 }
 0x112   :  { %v529_v23 = vadd.f32 %v528_v57, %v303_v19 }
 0x114   :  { %v311_v11 = vpop.f32.mrf.mxu0  ;;  %v699_v47 = vadd.f32 %v698_v27, %v529_v23  ;;  %1167 = vmatmul.f32.vlgmr.msrb.gmra.mxu1 %v2994_v17 }
 0x115   :  { %1328 = vmatmul.f32.gmra.mxu2 %v3045_v49 }
 0x116   :  { %v3723_v40 = vadd.f32 %v896_v7, %v699_v47  ;;  %1613 = vmatmul.f32.gmra.mxu3 %v3008_v28 }
 0x117   :  { %1022 = vmatmul.f32.gmra.mxu0 %v3008_v28 }
 0x118   :  { %v703_v3 = vpop.f32.mrf.mxu2 }
 0x119   :  { %v532_v42 = vpop.f32.mrf.mxu1  ;;  %v902_v15 = vpop.f32.mrf.mxu3 }
 0x11a   :  { %v533_v13 = vadd.f32 %v532_v42, %v311_v11 }
 0x11c   :  { %v319_v43 = vpop.f32.mrf.mxu0  ;;  %v704_v54 = vadd.f32 %v703_v3, %v533_v13  ;;  %1171 = vmatmul.f32.gmra.mxu1 %v3008_v28 }
 0x11d   :  { %1336 = vmatmul.f32.gmra.mxu2 %v3069_v56 }
 0x11e   :  { %v3729_v19 = vadd.f32 %v902_v15, %v704_v54  ;;  %1617 = vmatmul.f32.gmra.mxu3 %v3021_v35 }
 0x11f   :  { %1026 = vmatmul.f32.gmra.mxu0 %v3021_v35 }
 0x120   :  { %v708_v47 = vpop.f32.mrf.mxu2 }
 0x121   :  { %v536_v49 = vpop.f32.mrf.mxu1  ;;  %v908_v27 = vpop.f32.mrf.mxu3 }
 0x122   :  { %v537_v57 = vadd.f32 %v536_v49, %v319_v43 }
 0x124   :  { %v327_v23 = vpop.f32.mrf.mxu0  ;;  %v709_v7 = vadd.f32 %v708_v47, %v537_v57  ;;  %1175 = vmatmul.f32.gmra.mxu1 %v3021_v35 }
 0x125   :  { %1344 = vmatmul.f32.gmra.mxu2 %v3091_v63 }
 0x126   :  { %v3735_v11 = vadd.f32 %v908_v27, %v709_v7  ;;  %1621 = vmatmul.f32.gmra.mxu3 %v3050_v51 }
 0x127   :  { %1030 = vmatmul.f32.gmra.mxu0 %v3050_v51 }
 0x128   :  { %v713_v42 = vpop.f32.mrf.mxu2 }
 0x129   :  { %v540_v56 = vpop.f32.mrf.mxu1  ;;  %v914_v13 = vpop.f32.mrf.mxu3 }
 0x12a   :  { %v541_v3 = vadd.f32 %v540_v56, %v327_v23 }
 0x12c   :  { %v335_v15 = vpop.f32.mrf.mxu0  ;;  %v714_v54 = vadd.f32 %v713_v42, %v541_v3  ;;  %1179 = vmatmul.f32.gmra.mxu1 %v3050_v51 }
 0x12d   :  { %1352 = vmatmul.f32.gmra.mxu2 %v3111_v6 }
 0x12e   :  { %v3741_v43 = vadd.f32 %v914_v13, %v714_v54  ;;  %1625 = vmatmul.f32.gmra.mxu3 %v3074_v58 }
 0x12f   :  { %1034 = vmatmul.f32.gmra.mxu0 %v3074_v58 }
 0x130   :  { %v718_v49 = vpop.f32.mrf.mxu2 }
 0x131   :  { %v544_v63 = vpop.f32.mrf.mxu1  ;;  %v920_v57 = vpop.f32.mrf.mxu3 }
 0x132   :  { %v545_v47 = vadd.f32 %v544_v63, %v335_v15 }
 0x134   :  { %v343_v27 = vpop.f32.mrf.mxu0  ;;  %v719_v7 = vadd.f32 %v718_v49, %v545_v47  ;;  %1183 = vmatmul.f32.gmra.mxu1 %v3074_v58 }
 0x135   :  { %1360 = vmatmul.f32.gmra.mxu2 %v3141_v18 }
 0x136   :  { %v3747_v23 = vadd.f32 %v920_v57, %v719_v7  ;;  %1629 = vmatmul.f32.gmra.mxu3 %v3096_v1 }
 0x137   :  { %1038 = vmatmul.f32.gmra.mxu0 %v3096_v1 }
 0x138   :  { %v723_v56 = vpop.f32.mrf.mxu2 }
 0x139   :  { %v548_v6 = vpop.f32.mrf.mxu1  ;;  %v926_v3 = vpop.f32.mrf.mxu3 }
 0x13a   :  { %v549_v42 = vadd.f32 %v548_v6, %v343_v27 }
 0x13c   :  { %v351_v13 = vpop.f32.mrf.mxu0  ;;  %v724_v54 = vadd.f32 %v723_v56, %v549_v42  ;;  %1187 = vmatmul.f32.gmra.mxu1 %v3096_v1 }
 0x13d   :  { %1368 = vmatmul.f32.gmra.mxu2 %v3166_v33 }
 0x13e   :  { %v3753_v15 = vadd.f32 %v926_v3, %v724_v54  ;;  %1633 = vmatmul.f32.gmra.mxu3 %v3116_v8 }
 0x13f   :  { %1042 = vmatmul.f32.gmra.mxu0 %v3116_v8 }
 0x140   :  { %v728_v63 = vpop.f32.mrf.mxu2 }
 0x141   :  { %v552_v18 = vpop.f32.mrf.mxu1  ;;  %v932_v47 = vpop.f32.mrf.mxu3 }
 0x142   :  { %v553_v49 = vadd.f32 %v552_v18, %v351_v13 }
 0x144   :  { %v359_v57 = vpop.f32.mrf.mxu0  ;;  %v729_v7 = vadd.f32 %v728_v63, %v553_v49  ;;  %1191 = vmatmul.f32.gmra.mxu1 %v3116_v8 }
 0x145   :  { %1376 = vmatmul.f32.gmra.mxu2 %v3186_v44 }
 0x146   :  { %v3759_v27 = vadd.f32 %v932_v47, %v729_v7  ;;  %1637 = vmatmul.f32.gmra.mxu3 %v3146_v21 }
 0x147   :  { %1046 = vmatmul.f32.gmra.mxu0 %v3146_v21 }
 0x148   :  { %v733_v6 = vpop.f32.mrf.mxu2 }
 0x149   :  { %v556_v33 = vpop.f32.mrf.mxu1  ;;  %v938_v42 = vpop.f32.mrf.mxu3 }
 0x14a   :  { %v557_v56 = vadd.f32 %v556_v33, %v359_v57 }
 0x14c   :  { %v367_v3 = vpop.f32.mrf.mxu0  ;;  %v734_v54 = vadd.f32 %v733_v6, %v557_v56  ;;  %1195 = vmatmul.f32.gmra.mxu1 %v3146_v21 }
 0x14d   :  { %1384 = vmatmul.f32.gmra.mxu2 %v3206_v59 }
 0x14e   :  { %v3765_v13 = vadd.f32 %v938_v42, %v734_v54  ;;  %1641 = vmatmul.f32.gmra.mxu3 %v3171_v37 }
 0x14f   :  { %1050 = vmatmul.f32.gmra.mxu0 %v3171_v37 }
 0x150   :  { %v738_v18 = vpop.f32.mrf.mxu2 }
 0x151   :  { %v560_v44 = vpop.f32.mrf.mxu1  ;;  %v944_v49 = vpop.f32.mrf.mxu3 }
 0x152   :  { %v561_v63 = vadd.f32 %v560_v44, %v367_v3 }
 0x154   :  { %v375_v47 = vpop.f32.mrf.mxu0  ;;  %v739_v7 = vadd.f32 %v738_v18, %v561_v63  ;;  %1199 = vmatmul.f32.gmra.mxu1 %v3171_v37 }
 0x155   :  { %1392 = vmatmul.f32.gmra.mxu2 %v3226_v10 }
 0x156   :  { %v3771_v57 = vadd.f32 %v944_v49, %v739_v7  ;;  %1645 = vmatmul.f32.gmra.mxu3 %v3191_v46 }
 0x157   :  { %1054 = vmatmul.f32.gmra.mxu0 %v3191_v46 }
 0x158   :  { %v743_v33 = vpop.f32.mrf.mxu2 }
 0x159   :  { %v564_v59 = vpop.f32.mrf.mxu1  ;;  %v950_v56 = vpop.f32.mrf.mxu3 }
 0x15a   :  { %v565_v6 = vadd.f32 %v564_v59, %v375_v47 }
 0x15c   :  { %v383_v42 = vpop.f32.mrf.mxu0  ;;  %v744_v54 = vadd.f32 %v743_v33, %v565_v6  ;;  %1203 = vmatmul.f32.gmra.mxu1 %v3191_v46 }
 0x15d   :  { %1400 = vmatmul.f32.gmra.mxu2 %v3246_v32 }
 0x15e   :  { %v3777_v3 = vadd.f32 %v950_v56, %v744_v54  ;;  %1649 = vmatmul.f32.gmra.mxu3 %v3211_v62 }
 0x15f   :  { %1058 = vmatmul.f32.gmra.mxu0 %v3211_v62 }
 0x160   :  { %v748_v44 = vpop.f32.mrf.mxu2 }
 0x161   :  { %v568_v10 = vpop.f32.mrf.mxu1  ;;  %v956_v63 = vpop.f32.mrf.mxu3 }
 0x162   :  { %v569_v18 = vadd.f32 %v568_v10, %v383_v42 }
 0x164   :  { %v391_v49 = vpop.f32.mrf.mxu0  ;;  %v749_v7 = vadd.f32 %v748_v44, %v569_v18  ;;  %1207 = vmatmul.f32.gmra.mxu1 %v3211_v62 }
 0x165   :  { %1408 = vmatmul.f32.gmra.mxu2 %v3266_v2 }
 0x166   :  { %v3783_v47 = vadd.f32 %v956_v63, %v749_v7  ;;  %1653 = vmatmul.f32.gmra.mxu3 %v3231_v14 }
 0x167   :  { %1062 = vmatmul.f32.gmra.mxu0 %v3231_v14 }
 0x168   :  { %v753_v59 = vpop.f32.mrf.mxu2 }
 0x169   :  { %v572_v32 = vpop.f32.mrf.mxu1  ;;  %v962_v6 = vpop.f32.mrf.mxu3 }
 0x16a   :  { %v573_v33 = vadd.f32 %v572_v32, %v391_v49 }
 0x16c   :  { %v399_v56 = vpop.f32.mrf.mxu0  ;;  %v754_v54 = vadd.f32 %v753_v59, %v573_v33  ;;  %1211 = vmatmul.f32.gmra.mxu1 %v3231_v14 }
 0x16d   :  { %1416 = vmatmul.f32.gmra.mxu2 %v3286_v48 }
 0x16e   :  { %v3789_v42 = vadd.f32 %v962_v6, %v754_v54  ;;  %1657 = vmatmul.f32.gmra.mxu3 %v3251_v39 }
 0x16f   :  { %1066 = vmatmul.f32.gmra.mxu0 %v3251_v39 }
 0x170   :  { %v758_v10 = vpop.f32.mrf.mxu2 }
 0x171   :  { %v576_v2 = vpop.f32.mrf.mxu1  ;;  %v968_v18 = vpop.f32.mrf.mxu3 }
 0x172   :  { %v577_v44 = vadd.f32 %v576_v2, %v399_v56 }
 0x174   :  { %v407_v63 = vpop.f32.mrf.mxu0  ;;  %v759_v7 = vadd.f32 %v758_v10, %v577_v44  ;;  %1215 = vmatmul.f32.gmra.mxu1 %v3251_v39 }
 0x175   :  { %1424 = vmatmul.f32.gmra.mxu2 %v3316_v52 }
 0x176   :  { %v3795_v49 = vadd.f32 %v968_v18, %v759_v7  ;;  %1661 = vmatmul.f32.gmra.mxu3 %v3271_v9 }
 0x177   :  { %1070 = vmatmul.f32.gmra.mxu0 %v3271_v9 }
 0x178   :  { %v763_v32 = vpop.f32.mrf.mxu2 }
 0x179   :  { %v580_v48 = vpop.f32.mrf.mxu1  ;;  %v974_v33 = vpop.f32.mrf.mxu3 }
 0x17a   :  { %v581_v59 = vadd.f32 %v580_v48, %v407_v63 }
 0x17c   :  { %v415_v6 = vpop.f32.mrf.mxu0  ;;  %v764_v54 = vadd.f32 %v763_v32, %v581_v59  ;;  %1219 = vmatmul.f32.gmra.mxu1 %v3271_v9 }
 0x17d   :  { %1432 = vmatmul.f32.gmra.mxu2 %v3341_v36 }
 0x17e   :  { %v3801_v56 = vadd.f32 %v974_v33, %v764_v54  ;;  %1665 = vmatmul.f32.gmra.mxu3 %v3291_v26 }
 0x17f   :  { %1074 = vmatmul.f32.gmra.mxu0 %v3291_v26 }
 0x180   :  { %v768_v2 = vpop.f32.mrf.mxu2 }
 0x181   :  { %v584_v52 = vpop.f32.mrf.mxu1  ;;  %v980_v44 = vpop.f32.mrf.mxu3 }
 0x182   :  { %v585_v10 = vadd.f32 %v584_v52, %v415_v6 }
 0x184   :  { %v423_v18 = vpop.f32.mrf.mxu0  ;;  %v769_v7 = vadd.f32 %v768_v2, %v585_v10  ;;  %1223 = vmatmul.f32.gmra.mxu1 %v3291_v26 }
 0x185   :  { %1440 = vmatmul.f32.gmra.mxu2 %v3361_v25 }
 0x186   :  { %v3807_v63 = vadd.f32 %v980_v44, %v769_v7  ;;  %1669 = vmatmul.f32.gmra.mxu3 %v3321_v5 }
 0x187   :  { %1078 = vmatmul.f32.gmra.mxu0 %v3321_v5 }
 0x188   :  { %v773_v48 = vpop.f32.mrf.mxu2 }
 0x189   :  { %v588_v36 = vpop.f32.mrf.mxu1  ;;  %v986_v59 = vpop.f32.mrf.mxu3 }
 0x18a   :  { %v589_v32 = vadd.f32 %v588_v36, %v423_v18 }
 0x18c   :  { %v774_v33 = vadd.f32 %v773_v48, %v589_v32  ;;  %v1019_v54 = vpop.f32.mrf.mxu0  ;;  %1227 = vmatmul.f32.gmra.mxu1 %v3321_v5  ;;  %v4341_v48 = vld [vmem:[#allocation45_spill] sm:$0xff]  ;;  %v4343_v32 = vld [vmem:[#allocation51_spill] sm:$0xff] }
 0x18d   :  { %1448 = vmatmul.f32.gmra.mxu2 %v3381_v24  ;;  %v1020_v25 = vadd.f32 %v1019_v54, %v3412_v22  ;;  %v4342_v24 = vld [vmem:[#allocation40_spill] sm:$0xff] }
 0x18e   :  { %v3813_v6 = vadd.f32 %v986_v59, %v774_v33  ;;  %1673 = vmatmul.f32.gmra.mxu3 %v3346_v31 }
 0x18f   :  { %1082 = vmatmul.f32.gmra.mxu0 %v3346_v31 }
 0x190   :  { %4339 = vst [vmem:[#allocation99_spill] sm:$0xff] %v3813_v6  ;;  %v1321_v2 = vpop.f32.mrf.mxu2 }
 0x191   :  { %v1168_v52 = vpop.f32.mrf.mxu1  ;;  %v1610_v44 = vpop.f32.mrf.mxu3 }
 0x192   :  { %v1169_v10 = vadd.f32 %v1168_v52, %v1020_v25  ;;  %v3819_v18 = vadd.f32 %v1610_v44, %v1321_v2 }
 0x194   :  { %4340 = vst [vmem:[#allocation100_spill] sm:$0xff] %v3819_v18  ;;  %v2441_v7 = vmul.f32 0.5, %v1169_v10  ;;  %v1023_v36 = vpop.f32.mrf.mxu0  ;;  %1231 = vmatmul.f32.gmra.mxu1 %v3346_v31  ;;  %v4346_v18 = vld [vmem:[#allocation43_spill] sm:$0xff] }
 0x195   :  { %1456 = vmatmul.f32.gmra.mxu2 %v4341_v48  ;;  %v1024_v59 = vadd.f32 %v1023_v36, %v4343_v32  ;;  %v4345_v48 = vld [vmem:[#allocation49_spill] sm:$0xff]  ;;  %v4347_v36 = vld [vmem:[#allocation55_spill] sm:$0xff] }
 0x196   :  { %2782 = vtanh.f32 %v2441_v7  ;;  %1677 = vmatmul.f32.gmra.mxu3 %v4342_v24 }
 0x197   :  { %1086 = vmatmul.f32.gmra.mxu0 %v4342_v24 }
 0x198   :  { %v1329_v33 = vpop.f32.mrf.mxu2 }
 0x199   :  { %v1172_v22 = vpop.f32.mrf.mxu1  ;;  %v1614_v25 = vpop.f32.mrf.mxu3 }
 0x19a   :  { %v1173_v54 = vadd.f32 %v1172_v22, %v1024_v59  ;;  %v3826_v52 = vadd.f32 %v1614_v25, %v1329_v33 }
 0x19c   :  { %4344 = vst [vmem:[#allocation45_spill] sm:$0xff] %v3826_v52  ;;  %v2783_v2 = vpop.eup %2782  ;;  %v2443_v10 = vmul.f32 0.5, %v1173_v54  ;;  %v1027_v44 = vpop.f32.mrf.mxu0  ;;  %1235 = vmatmul.f32.gmra.mxu1 %v4342_v24 }
 0x19d   :  { %v2569_v7 = vadd.f32 1.0, %v2783_v2  ;;  %1464 = vmatmul.f32.gmra.mxu2 %v4345_v48  ;;  %v1028_v32 = vadd.f32 %v1027_v44, %v4347_v36  ;;  %v4349_v48 = vld [vmem:[#allocation53_spill] sm:$0xff] }
 0x19e   :  { %2784 = vtanh.f32 %v2443_v10  ;;  %1681 = vmatmul.f32.gmra.mxu3 %v4346_v18 }
 0x19f   :  { %v2633_v31 = vmul.f32 0.5, %v2569_v7  ;;  %1090 = vmatmul.f32.gmra.mxu0 %v4346_v18  ;;  %v4350_v7 = vld [vmem:[#allocation47_spill] sm:$0xff] }
 0x1a0   :  { %v1337_v22 = vpop.f32.mrf.mxu2 }
 0x1a1   :  { %2697 = vst [vmem:[#allocation2] sm:$0xff] %v2633_v31  ;;  %v1176_v59 = vpop.f32.mrf.mxu1  ;;  %v1618_v25 = vpop.f32.mrf.mxu3  ;;  %v4351_v31 = vld [vmem:[#allocation59_spill] sm:$0xff] }
 0x1a2   :  { %v1177_v33 = vadd.f32 %v1176_v59, %v1028_v32  ;;  %v3833_v54 = vadd.f32 %v1618_v25, %v1337_v22 }
 0x1a4   :  { %4348 = vst [vmem:[#allocation51_spill] sm:$0xff] %v3833_v54  ;;  %v2785_v52 = vpop.eup %2784  ;;  %v2445_v24 = vmul.f32 0.5, %v1177_v33  ;;  %v1031_v2 = vpop.f32.mrf.mxu0  ;;  %1239 = vmatmul.f32.gmra.mxu1 %v4346_v18 }
 0x1a5   :  { %v2571_v10 = vadd.f32 1.0, %v2785_v52  ;;  %1472 = vmatmul.f32.gmra.mxu2 %v4349_v48  ;;  %v1032_v44 = vadd.f32 %v1031_v2, %v4351_v31  ;;  %v4352_v48 = vld [vmem:[#allocation57_spill] sm:$0xff] }
 0x1a6   :  { %2786 = vtanh.f32 %v2445_v24  ;;  %1685 = vmatmul.f32.gmra.mxu3 %v4350_v7 }
 0x1a7   :  { %v2635_v6 = vmul.f32 0.5, %v2571_v10  ;;  %1094 = vmatmul.f32.gmra.mxu0 %v4350_v7 }
 0x1a8   :  { %v1345_v32 = vpop.f32.mrf.mxu2 }
 0x1a9   :  { %2699 = vst [vmem:[#allocation2 + $0x10] sm:$0xff] %v2635_v6  ;;  %v1180_v36 = vpop.f32.mrf.mxu1  ;;  %v1622_v22 = vpop.f32.mrf.mxu3 }
 0x1aa   :  { %v1181_v59 = vadd.f32 %v1180_v36, %v1032_v44  ;;  %v3840_v33 = vadd.f32 %v1622_v22, %v1345_v32 }
 0x1ac   :  { %v2787_v25 = vpop.eup %2786  ;;  %v2447_v54 = vmul.f32 0.5, %v1181_v59  ;;  %v1035_v52 = vpop.f32.mrf.mxu0  ;;  %1243 = vmatmul.f32.gmra.mxu1 %v4350_v7 }
 0x1ad   :  { %v2573_v24 = vadd.f32 1.0, %v2787_v25  ;;  %1480 = vmatmul.f32.gmra.mxu2 %v4352_v48  ;;  %v1036_v6 = vadd.f32 %v1035_v52, %v3507_v12  ;;  %v4353_v48 = vld [vmem:[#allocation61_spill] sm:$0xff] }
 0x1ae   :  { %2788 = vtanh.f32 %v2447_v54  ;;  %1689 = vmatmul.f32.gmra.mxu3 %v3428_v20 }
 0x1af   :  { %v2637_v10 = vmul.f32 0.5, %v2573_v24  ;;  %1098 = vmatmul.f32.gmra.mxu0 %v3428_v20 }
 0x1b0   :  { %v1353_v31 = vpop.f32.mrf.mxu2 }
 0x1b1   :  { %2701 = vst [vmem:[#allocation2 + $0x20] sm:$0xff] %v2637_v10  ;;  %v1184_v2 = vpop.f32.mrf.mxu1  ;;  %v1626_v36 = vpop.f32.mrf.mxu3 }
 0x1b2   :  { %v1185_v44 = vadd.f32 %v1184_v2, %v1036_v6  ;;  %v3847_v32 = vadd.f32 %v1626_v36, %v1353_v31 }
 0x1b4   :  { %v2789_v59 = vpop.eup %2788  ;;  %v2449_v22 = vmul.f32 0.5, %v1185_v44  ;;  %v1039_v25 = vpop.f32.mrf.mxu0  ;;  %1247 = vmatmul.f32.gmra.mxu1 %v3428_v20 }
 0x1b5   :  { %v2575_v54 = vadd.f32 1.0, %v2789_v59  ;;  %1488 = vmatmul.f32.gmra.mxu2 %v4353_v48  ;;  %v1040_v12 = vadd.f32 %v1039_v25, %v3533_v29 }
 0x1b6   :  { %2790 = vtanh.f32 %v2449_v22  ;;  %1693 = vmatmul.f32.gmra.mxu3 %v3450_v60 }
 0x1b7   :  { %v2639_v24 = vmul.f32 0.5, %v2575_v54  ;;  %1102 = vmatmul.f32.gmra.mxu0 %v3450_v60 }
 0x1b8   :  { %v1361_v10 = vpop.f32.mrf.mxu2 }
 0x1b9   :  { %2703 = vst [vmem:[#allocation2 + $0x30] sm:$0xff] %v2639_v24  ;;  %v1188_v52 = vpop.f32.mrf.mxu1  ;;  %v1630_v2 = vpop.f32.mrf.mxu3 }
 0x1ba   :  { %v1189_v6 = vadd.f32 %v1188_v52, %v1040_v12  ;;  %v3854_v31 = vadd.f32 %v1630_v2, %v1361_v10 }
 0x1bc   :  { %v2791_v44 = vpop.eup %2790  ;;  %v2451_v36 = vmul.f32 0.5, %v1189_v6  ;;  %v1043_v59 = vpop.f32.mrf.mxu0  ;;  %1251 = vmatmul.f32.gmra.mxu1 %v3450_v60 }
 0x1bd   :  { %v2577_v22 = vadd.f32 1.0, %v2791_v44  ;;  %1496 = vmatmul.f32.gmra.mxu2 %v3520_v41  ;;  %v1044_v29 = vadd.f32 %v1043_v59, %v3556_v16  ;;  %v4355_v44 = vld [vmem:[#allocation63_spill] sm:$0xff]  ;;  %v4356_v16 = vld [vmem:[#allocation74_spill] sm:$0xff] }
 0x1be   :  { %2792 = vtanh.f32 %v2451_v36  ;;  %1697 = vmatmul.f32.gmra.mxu3 %v3472_v61 }
 0x1bf   :  { %v2641_v54 = vmul.f32 0.5, %v2577_v22  ;;  %1106 = vmatmul.f32.gmra.mxu0 %v3472_v61 }
 0x1c0   :  { %v1369_v48 = vpop.f32.mrf.mxu2 }
 0x1c1   :  { %2705 = vst [vmem:[#allocation2 + $0x40] sm:$0xff] %v2641_v54  ;;  %v1192_v25 = vpop.f32.mrf.mxu1  ;;  %v1634_v12 = vpop.f32.mrf.mxu3 }
 0x1c2   :  { %v1193_v24 = vadd.f32 %v1192_v25, %v1044_v29  ;;  %v3861_v52 = vadd.f32 %v1634_v12, %v1369_v48 }
 0x1c4   :  { %4354 = vst [vmem:[#allocation49_spill] sm:$0xff] %v3861_v52  ;;  %v2793_v10 = vpop.eup %2792  ;;  %v2453_v6 = vmul.f32 0.5, %v1193_v24  ;;  %v1047_v2 = vpop.f32.mrf.mxu0  ;;  %1255 = vmatmul.f32.gmra.mxu1 %v3472_v61 }
 0x1c5   :  { %v2579_v41 = vadd.f32 1.0, %v2793_v10  ;;  %1504 = vmatmul.f32.gmra.mxu2 %v3545_v0  ;;  %v1048_v59 = vadd.f32 %v1047_v2, %v4356_v16  ;;  %v4360_v2 = vld [vmem:[#allocation79_spill] sm:$0xff] }
 0x1c6   :  { %2794 = vtanh.f32 %v2453_v6  ;;  %1701 = vmatmul.f32.gmra.mxu3 %v4355_v44  ;;  %v4358_v6 = vld [vmem:[#allocation71_spill] sm:$0xff] }
 0x1c7   :  { %v2643_v36 = vmul.f32 0.5, %v2579_v41  ;;  %1110 = vmatmul.f32.gmra.mxu0 %v4355_v44  ;;  %v4359_v41 = vld [vmem:[#allocation66_spill] sm:$0xff] }
 0x1c8   :  { %v1377_v54 = vpop.f32.mrf.mxu2 }
 0x1c9   :  { %2707 = vst [vmem:[#allocation2 + $0x50] sm:$0xff] %v2643_v36  ;;  %v1196_v22 = vpop.f32.mrf.mxu1  ;;  %v1638_v25 = vpop.f32.mrf.mxu3 }
 0x1ca   :  { %v1197_v29 = vadd.f32 %v1196_v22, %v1048_v59  ;;  %v3868_v48 = vadd.f32 %v1638_v25, %v1377_v54 }
 0x1cc   :  { %4357 = vst [vmem:[#allocation43_spill] sm:$0xff] %v3868_v48  ;;  %v2795_v24 = vpop.eup %2794  ;;  %v2455_v12 = vmul.f32 0.5, %v1197_v29  ;;  %v1051_v10 = vpop.f32.mrf.mxu0  ;;  %1259 = vmatmul.f32.gmra.mxu1 %v4355_v44 }
 0x1cd   :  { %v2581_v0 = vadd.f32 1.0, %v2795_v24  ;;  %1512 = vmatmul.f32.gmra.mxu2 %v4358_v6  ;;  %v1052_v36 = vadd.f32 %v1051_v10, %v4360_v2  ;;  %v4362_v6 = vld [vmem:[#allocation76_spill] sm:$0xff] }
 0x1ce   :  { %2796 = vtanh.f32 %v2455_v12  ;;  %1705 = vmatmul.f32.gmra.mxu3 %v4359_v41 }
 0x1cf   :  { %v2645_v52 = vmul.f32 0.5, %v2581_v0  ;;  %1114 = vmatmul.f32.gmra.mxu0 %v4359_v41  ;;  %v4363_v0 = vld [vmem:[#allocation69_spill] sm:$0xff] }
 0x1d0   :  { %v1385_v59 = vpop.f32.mrf.mxu2 }
 0x1d1   :  { %2709 = vst [vmem:[#allocation2 + $0x60] sm:$0xff] %v2645_v52  ;;  %v1200_v16 = vpop.f32.mrf.mxu1  ;;  %v1642_v54 = vpop.f32.mrf.mxu3  ;;  %v4364_v52 = vld [vmem:[#allocation83_spill] sm:$0xff] }
 0x1d2   :  { %v1201_v22 = vadd.f32 %v1200_v16, %v1052_v36  ;;  %v3875_v29 = vadd.f32 %v1642_v54, %v1385_v59 }
 0x1d4   :  { %4361 = vst [vmem:[#allocation55_spill] sm:$0xff] %v3875_v29  ;;  %v2797_v25 = vpop.eup %2796  ;;  %v2457_v48 = vmul.f32 0.5, %v1201_v22  ;;  %v1055_v24 = vpop.f32.mrf.mxu0  ;;  %1263 = vmatmul.f32.gmra.mxu1 %v4359_v41 }
 0x1d5   :  { %v2583_v12 = vadd.f32 1.0, %v2797_v25  ;;  %1520 = vmatmul.f32.gmra.mxu2 %v4362_v6  ;;  %v1056_v10 = vadd.f32 %v1055_v24, %v4364_v52  ;;  %v4366_v6 = vld [vmem:[#allocation81_spill] sm:$0xff] }
 0x1d6   :  { %2798 = vtanh.f32 %v2457_v48  ;;  %1709 = vmatmul.f32.gmra.mxu3 %v4363_v0 }
 0x1d7   :  { %v2647_v44 = vmul.f32 0.5, %v2583_v12  ;;  %1118 = vmatmul.f32.gmra.mxu0 %v4363_v0  ;;  %v4367_v12 = vld [vmem:[#allocation73_spill] sm:$0xff] }
 0x1d8   :  { %v1393_v36 = vpop.f32.mrf.mxu2 }
 0x1d9   :  { %2711 = vst [vmem:[#allocation2 + $0x70] sm:$0xff] %v2647_v44  ;;  %v1204_v2 = vpop.f32.mrf.mxu1  ;;  %v1646_v59 = vpop.f32.mrf.mxu3  ;;  %v4368_v44 = vld [vmem:[#allocation87_spill] sm:$0xff] }
 0x1da   :  { %v1205_v16 = vadd.f32 %v1204_v2, %v1056_v10  ;;  %v3882_v22 = vadd.f32 %v1646_v59, %v1393_v36 }
 0x1dc   :  { %4365 = vst [vmem:[#allocation53_spill] sm:$0xff] %v3882_v22  ;;  %v2799_v54 = vpop.eup %2798  ;;  %v2459_v29 = vmul.f32 0.5, %v1205_v16  ;;  %v1059_v25 = vpop.f32.mrf.mxu0  ;;  %1267 = vmatmul.f32.gmra.mxu1 %v4363_v0 }
 0x1dd   :  { %v2585_v48 = vadd.f32 1.0, %v2799_v54  ;;  %1528 = vmatmul.f32.gmra.mxu2 %v4366_v6  ;;  %v1060_v24 = vadd.f32 %v1059_v25, %v4368_v44  ;;  %v4370_v6 = vld [vmem:[#allocation85_spill] sm:$0xff] }
 0x1de   :  { %2800 = vtanh.f32 %v2459_v29  ;;  %1713 = vmatmul.f32.gmra.mxu3 %v4367_v12 }
 0x1df   :  { %v2649_v41 = vmul.f32 0.5, %v2585_v48  ;;  %1122 = vmatmul.f32.gmra.mxu0 %v4367_v12  ;;  %v4371_v48 = vld [vmem:[#allocation78_spill] sm:$0xff] }
 0x1e0   :  { %v1401_v10 = vpop.f32.mrf.mxu2 }
 0x1e1   :  { %2713 = vst [vmem:[#allocation2 + $0x80] sm:$0xff] %v2649_v41  ;;  %v1208_v52 = vpop.f32.mrf.mxu1  ;;  %v1650_v36 = vpop.f32.mrf.mxu3  ;;  %v4372_v41 = vld [vmem:[#allocation91_spill] sm:$0xff] }
 0x1e2   :  { %v1209_v2 = vadd.f32 %v1208_v52, %v1060_v24  ;;  %v3889_v16 = vadd.f32 %v1650_v36, %v1401_v10 }
 0x1e4   :  { %4369 = vst [vmem:[#allocation47_spill] sm:$0xff] %v3889_v16  ;;  %v2801_v59 = vpop.eup %2800  ;;  %v2461_v22 = vmul.f32 0.5, %v1209_v2  ;;  %v1063_v54 = vpop.f32.mrf.mxu0  ;;  %1271 = vmatmul.f32.gmra.mxu1 %v4367_v12 }
 0x1e5   :  { %v2587_v29 = vadd.f32 1.0, %v2801_v59  ;;  %1536 = vmatmul.f32.gmra.mxu2 %v4370_v6  ;;  %v1064_v25 = vadd.f32 %v1063_v54, %v4372_v41  ;;  %v4374_v6 = vld [vmem:[#allocation89_spill] sm:$0xff] }
 0x1e6   :  { %2802 = vtanh.f32 %v2461_v22  ;;  %1717 = vmatmul.f32.gmra.mxu3 %v4371_v48 }
 0x1e7   :  { %v2651_v0 = vmul.f32 0.5, %v2587_v29  ;;  %1126 = vmatmul.f32.gmra.mxu0 %v4371_v48 }
 0x1e8   :  { %v1409_v24 = vpop.f32.mrf.mxu2 }
 0x1e9   :  { %2715 = vst [vmem:[#allocation2 + $0x90] sm:$0xff] %v2651_v0  ;;  %v1212_v44 = vpop.f32.mrf.mxu1  ;;  %v1654_v10 = vpop.f32.mrf.mxu3  ;;  %v4375_v0 = vld [vmem:[#allocation95_spill] sm:$0xff] }
 0x1ea   :  { %v1213_v52 = vadd.f32 %v1212_v44, %v1064_v25  ;;  %v3896_v2 = vadd.f32 %v1654_v10, %v1409_v24 }
 0x1ec   :  { %4373 = vst [vmem:[#allocation59_spill] sm:$0xff] %v3896_v2  ;;  %v2803_v36 = vpop.eup %2802  ;;  %v2463_v16 = vmul.f32 0.5, %v1213_v52  ;;  %v1067_v59 = vpop.f32.mrf.mxu0  ;;  %1275 = vmatmul.f32.gmra.mxu1 %v4371_v48 }
 0x1ed   :  { %v2589_v22 = vadd.f32 1.0, %v2803_v36  ;;  %1544 = vmatmul.f32.gmra.mxu2 %v4374_v6  ;;  %v1068_v54 = vadd.f32 %v1067_v59, %v4375_v0  ;;  %v4376_v6 = vld [vmem:[#allocation93_spill] sm:$0xff] }
 0x1ee   :  { %2804 = vtanh.f32 %v2463_v16  ;;  %1721 = vmatmul.f32.gmra.mxu3 %v3616_v4 }
 0x1ef   :  { %v2653_v29 = vmul.f32 0.5, %v2589_v22  ;;  %1130 = vmatmul.f32.gmra.mxu0 %v3616_v4 }
 0x1f0   :  { %v1417_v25 = vpop.f32.mrf.mxu2 }
 0x1f1   :  { %2717 = vst [vmem:[#allocation2 + $0xa0] sm:$0xff] %v2653_v29  ;;  %v1216_v41 = vpop.f32.mrf.mxu1  ;;  %v1658_v24 = vpop.f32.mrf.mxu3 }
 0x1f2   :  { %v1217_v44 = vadd.f32 %v1216_v41, %v1068_v54  ;;  %v3903_v52 = vadd.f32 %v1658_v24, %v1417_v25 }
 0x1f4   :  { %v2805_v10 = vpop.eup %2804  ;;  %v2465_v2 = vmul.f32 0.5, %v1217_v44  ;;  %v1071_v36 = vpop.f32.mrf.mxu0  ;;  %1279 = vmatmul.f32.gmra.mxu1 %v3616_v4 }
 0x1f5   :  { %v2591_v16 = vadd.f32 1.0, %v2805_v10  ;;  %1552 = vmatmul.f32.gmra.mxu2 %v4376_v6  ;;  %v1072_v59 = vadd.f32 %v1071_v36, %v3701_v30  ;;  %v4377_v6 = vld [vmem:[#allocation97_spill] sm:$0xff] }
 0x1f6   :  { %2806 = vtanh.f32 %v2465_v2  ;;  %1725 = vmatmul.f32.gmra.mxu3 %v3638_v50 }
 0x1f7   :  { %v2655_v22 = vmul.f32 0.5, %v2591_v16  ;;  %1134 = vmatmul.f32.gmra.mxu0 %v3638_v50 }
 0x1f8   :  { %v1425_v0 = vpop.f32.mrf.mxu2 }
 0x1f9   :  { %2719 = vst [vmem:[#allocation2 + $0xb0] sm:$0xff] %v2655_v22  ;;  %v1220_v29 = vpop.f32.mrf.mxu1  ;;  %v1662_v41 = vpop.f32.mrf.mxu3 }
 0x1fa   :  { %v1221_v54 = vadd.f32 %v1220_v29, %v1072_v59  ;;  %v3910_v25 = vadd.f32 %v1662_v41, %v1425_v0 }
 0x1fc   :  { %v2807_v44 = vpop.eup %2806  ;;  %v2467_v24 = vmul.f32 0.5, %v1221_v54  ;;  %v1075_v10 = vpop.f32.mrf.mxu0  ;;  %1283 = vmatmul.f32.gmra.mxu1 %v3638_v50 }
 0x1fd   :  { %v2593_v2 = vadd.f32 1.0, %v2807_v44  ;;  %1560 = vmatmul.f32.gmra.mxu2 %v4377_v6  ;;  %v1076_v30 = vadd.f32 %v1075_v10, %v3711_v53 }
 0x1fe   :  { %2808 = vtanh.f32 %v2467_v24  ;;  %1729 = vmatmul.f32.gmra.mxu3 %v3660_v34 }
 0x1ff   :  { %v2657_v16 = vmul.f32 0.5, %v2593_v2  ;;  %1138 = vmatmul.f32.gmra.mxu0 %v3660_v34 }
 0x200   :  { %v1433_v22 = vpop.f32.mrf.mxu2 }
 0x201   :  { %2721 = vst [vmem:[#allocation2 + $0xc0] sm:$0xff] %v2657_v16  ;;  %v1224_v36 = vpop.f32.mrf.mxu1  ;;  %v1666_v29 = vpop.f32.mrf.mxu3 }
 0x202   :  { %v1225_v59 = vadd.f32 %v1224_v36, %v1076_v30  ;;  %v3917_v0 = vadd.f32 %v1666_v29, %v1433_v22 }
 0x204   :  { %v2809_v54 = vpop.eup %2808  ;;  %v2469_v41 = vmul.f32 0.5, %v1225_v59  ;;  %v1079_v44 = vpop.f32.mrf.mxu0  ;;  %1287 = vmatmul.f32.gmra.mxu1 %v3660_v34 }
 0x205   :  { %v2595_v24 = vadd.f32 1.0, %v2809_v54  ;;  %1568 = vmatmul.f32.gmra.mxu2 %v3708_v38  ;;  %v1080_v53 = vadd.f32 %v1079_v44, %v3717_v45  ;;  %v4378_v45 = vld [vmem:[#allocation5_spill] sm:$0xff] }
 0x206   :  { %2810 = vtanh.f32 %v2469_v41  ;;  %1733 = vmatmul.f32.gmra.mxu3 %v3682_v55 }
 0x207   :  { %v2659_v2 = vmul.f32 0.5, %v2595_v24  ;;  %1142 = vmatmul.f32.gmra.mxu0 %v3682_v55 }
 0x208   :  { %v1441_v6 = vpop.f32.mrf.mxu2 }
 0x209   :  { %2723 = vst [vmem:[#allocation2 + $0xd0] sm:$0xff] %v2659_v2  ;;  %v1228_v10 = vpop.f32.mrf.mxu1  ;;  %v1670_v30 = vpop.f32.mrf.mxu3 }
 0x20a   :  { %v1229_v16 = vadd.f32 %v1228_v10, %v1080_v53  ;;  %v3924_v36 = vadd.f32 %v1670_v30, %v1441_v6 }
 0x20c   :  { %v2811_v22 = vpop.eup %2810  ;;  %v2471_v59 = vmul.f32 0.5, %v1229_v16  ;;  %v1083_v29 = vpop.f32.mrf.mxu0  ;;  %1291 = vmatmul.f32.gmra.mxu1 %v3682_v55 }
 0x20d   :  { %v2597_v38 = vadd.f32 1.0, %v2811_v22  ;;  %2164 = vmatmul.f32.vlgmr.msra.gmra.mxu2 %v2994_v17  ;;  %v1084_v41 = vadd.f32 %v1083_v29, %v3723_v40  ;;  %v4379_v22 = vld [vmem:[#allocation6_spill] sm:$0xff]  ;;  %v4380_v40 = vld [vmem:[#allocation7_spill] sm:$0xff] }
 0x20e   :  { %2812 = vtanh.f32 %v2471_v59  ;;  %2313 = vmatmul.f32.vlgmr.msra.gmra.mxu3 %v2994_v17 }
 0x20f   :  { %v2661_v54 = vmul.f32 0.5, %v2597_v38  ;;  %1763 = vmatmul.f32.vlgmr.msra.gmra.mxu0 %v4378_v45 }
 0x210   :  { %v1449_v24 = vpop.f32.mrf.mxu2 }
 0x211   :  { %2725 = vst [vmem:[#allocation2 + $0xe0] sm:$0xff] %v2661_v54  ;;  %v1232_v44 = vpop.f32.mrf.mxu1  ;;  %v1674_v53 = vpop.f32.mrf.mxu3 }
 0x212   :  { %v1233_v2 = vadd.f32 %v1232_v44, %v1084_v41  ;;  %v3931_v10 = vadd.f32 %v1674_v53, %v1449_v24 }
 0x214   :  { %v2813_v6 = vpop.eup %2812  ;;  %v2473_v16 = vmul.f32 0.5, %v1233_v2  ;;  %v1087_v30 = vpop.f32.mrf.mxu0  ;;  %1945 = vmatmul.f32.vlgmr.msra.gmra.mxu1 %v4379_v22 }
 0x215   :  { %v2599_v59 = vadd.f32 1.0, %v2813_v6  ;;  %2168 = vmatmul.f32.gmra.mxu2 %v3008_v28  ;;  %v1088_v29 = vadd.f32 %v1087_v30, %v3729_v19  ;;  %v4381_v6 = vld [vmem:[#allocation8_spill] sm:$0xff]  ;;  %v4382_v19 = vld [vmem:[#allocation9_spill] sm:$0xff] }
 0x216   :  { %2814 = vtanh.f32 %v2473_v16  ;;  %2317 = vmatmul.f32.gmra.mxu3 %v3008_v28 }
 0x217   :  { %v2663_v17 = vmul.f32 0.5, %v2599_v59  ;;  %1768 = vmatmul.f32.gmra.mxu0 %v4380_v40 }
 0x218   :  { %v1457_v54 = vpop.f32.mrf.mxu2 }
 0x219   :  { %2727 = vst [vmem:[#allocation2 + $0xf0] sm:$0xff] %v2663_v17  ;;  %v1236_v38 = vpop.f32.mrf.mxu1  ;;  %v1678_v41 = vpop.f32.mrf.mxu3 }
 0x21a   :  { %v1237_v45 = vadd.f32 %v1236_v38, %v1088_v29  ;;  %v3938_v44 = vadd.f32 %v1678_v41, %v1457_v54  ;;  %v4383_v41 = vld [vmem:[#allocation10_spill] sm:$0xff] }
 0x21c   :  { %v2815_v24 = vpop.eup %2814  ;;  %v2475_v2 = vmul.f32 0.5, %v1237_v45  ;;  %v1091_v53 = vpop.f32.mrf.mxu0  ;;  %1951 = vmatmul.f32.gmra.mxu1 %v4381_v6 }
 0x21d   :  { %v2601_v16 = vadd.f32 1.0, %v2815_v24  ;;  %2172 = vmatmul.f32.gmra.mxu2 %v3021_v35  ;;  %v1092_v30 = vadd.f32 %v1091_v53, %v3735_v11  ;;  %v4384_v11 = vld [vmem:[#allocation11_spill] sm:$0xff] }
 0x21e   :  { %2816 = vtanh.f32 %v2475_v2  ;;  %2321 = vmatmul.f32.gmra.mxu3 %v3021_v35 }
 0x21f   :  { %v2665_v28 = vmul.f32 0.5, %v2601_v16  ;;  %1773 = vmatmul.f32.gmra.mxu0 %v4382_v19 }
 0x220   :  { %v1465_v59 = vpop.f32.mrf.mxu2 }
 0x221   :  { %2729 = vst [vmem:[#allocation2 + $0x100] sm:$0xff] %v2665_v28  ;;  %v1240_v22 = vpop.f32.mrf.mxu1  ;;  %v1682_v40 = vpop.f32.mrf.mxu3 }
 0x222   :  { %v1241_v17 = vadd.f32 %v1240_v22, %v1092_v30  ;;  %v3945_v29 = vadd.f32 %v1682_v40, %v1465_v59 }
 0x224   :  { %v2817_v38 = vpop.eup %2816  ;;  %v2477_v54 = vmul.f32 0.5, %v1241_v17  ;;  %v1095_v45 = vpop.f32.mrf.mxu0  ;;  %1957 = vmatmul.f32.gmra.mxu1 %v4383_v41  ;;  %v4385_v17 = vld [vmem:[#allocation12_spill] sm:$0xff] }
 0x225   :  { %v2603_v24 = vadd.f32 1.0, %v2817_v38  ;;  %2176 = vmatmul.f32.gmra.mxu2 %v3050_v51  ;;  %v1096_v2 = vadd.f32 %v1095_v45, %v3741_v43  ;;  %v4386_v43 = vld [vmem:[#allocation13_spill] sm:$0xff] }
 0x226   :  { %2818 = vtanh.f32 %v2477_v54  ;;  %2325 = vmatmul.f32.gmra.mxu3 %v3050_v51 }
 0x227   :  { %v2667_v35 = vmul.f32 0.5, %v2603_v24  ;;  %1778 = vmatmul.f32.gmra.mxu0 %v4384_v11 }
 0x228   :  { %v1473_v6 = vpop.f32.mrf.mxu2 }
 0x229   :  { %2731 = vst [vmem:[#allocation2 + $0x110] sm:$0xff] %v2667_v35  ;;  %v1244_v53 = vpop.f32.mrf.mxu1  ;;  %v1686_v28 = vpop.f32.mrf.mxu3 }
 0x22a   :  { %v1245_v16 = vadd.f32 %v1244_v53, %v1096_v2  ;;  %v3952_v19 = vadd.f32 %v1686_v28, %v1473_v6  ;;  %v4387_v6 = vld [vmem:[#allocation14_spill] sm:$0xff] }
 0x22c   :  { %v2819_v30 = vpop.eup %2818  ;;  %v2479_v22 = vmul.f32 0.5, %v1245_v16  ;;  %v1099_v59 = vpop.f32.mrf.mxu0  ;;  %1963 = vmatmul.f32.gmra.mxu1 %v4385_v17 }
 0x22d   :  { %v2605_v40 = vadd.f32 1.0, %v2819_v30  ;;  %2180 = vmatmul.f32.gmra.mxu2 %v3074_v58  ;;  %v1100_v38 = vadd.f32 %v1099_v59, %v3747_v23  ;;  %v4388_v23 = vld [vmem:[#allocation15_spill] sm:$0xff] }
 0x22e   :  { %2820 = vtanh.f32 %v2479_v22  ;;  %2329 = vmatmul.f32.gmra.mxu3 %v3074_v58 }
 0x22f   :  { %v2669_v51 = vmul.f32 0.5, %v2605_v40  ;;  %1783 = vmatmul.f32.gmra.mxu0 %v4386_v43 }
 0x230   :  { %v1481_v45 = vpop.f32.mrf.mxu2 }
 0x231   :  { %2733 = vst [vmem:[#allocation2 + $0x120] sm:$0xff] %v2669_v51  ;;  %v1248_v54 = vpop.f32.mrf.mxu1  ;;  %v1690_v24 = vpop.f32.mrf.mxu3 }
 0x232   :  { %v1249_v41 = vadd.f32 %v1248_v54, %v1100_v38  ;;  %v3959_v35 = vadd.f32 %v1690_v24, %v1481_v45  ;;  %v4389_v54 = vld [vmem:[#allocation16_spill] sm:$0xff] }
 0x234   :  { %v2821_v11 = vpop.eup %2820  ;;  %v2481_v2 = vmul.f32 0.5, %v1249_v41  ;;  %v1103_v53 = vpop.f32.mrf.mxu0  ;;  %1969 = vmatmul.f32.gmra.mxu1 %v4387_v6 }
 0x235   :  { %v2607_v16 = vadd.f32 1.0, %v2821_v11  ;;  %2184 = vmatmul.f32.gmra.mxu2 %v3096_v1  ;;  %v1104_v28 = vadd.f32 %v1103_v53, %v3753_v15  ;;  %v4390_v15 = vld [vmem:[#allocation17_spill] sm:$0xff] }
 0x236   :  { %2822 = vtanh.f32 %v2481_v2  ;;  %2333 = vmatmul.f32.gmra.mxu3 %v3096_v1 }
 0x237   :  { %v2671_v58 = vmul.f32 0.5, %v2607_v16  ;;  %1788 = vmatmul.f32.gmra.mxu0 %v4388_v23 }
 0x238   :  { %v1489_v22 = vpop.f32.mrf.mxu2 }
 0x239   :  { %2735 = vst [vmem:[#allocation2 + $0x130] sm:$0xff] %v2671_v58  ;;  %v1252_v30 = vpop.f32.mrf.mxu1  ;;  %v1694_v17 = vpop.f32.mrf.mxu3 }
 0x23a   :  { %v1253_v59 = vadd.f32 %v1252_v30, %v1104_v28  ;;  %v3966_v40 = vadd.f32 %v1694_v17, %v1489_v22  ;;  %v4391_v28 = vld [vmem:[#allocation18_spill] sm:$0xff] }
 0x23c   :  { %v2823_v51 = vpop.eup %2822  ;;  %v2483_v43 = vmul.f32 0.5, %v1253_v59  ;;  %v1107_v38 = vpop.f32.mrf.mxu0  ;;  %1975 = vmatmul.f32.gmra.mxu1 %v4389_v54 }
 0x23d   :  { %v2609_v45 = vadd.f32 1.0, %v2823_v51  ;;  %2188 = vmatmul.f32.gmra.mxu2 %v3116_v8  ;;  %v1108_v41 = vadd.f32 %v1107_v38, %v3759_v27  ;;  %v4392_v27 = vld [vmem:[#allocation19_spill] sm:$0xff] }
 0x23e   :  { %2824 = vtanh.f32 %v2483_v43  ;;  %2337 = vmatmul.f32.gmra.mxu3 %v3116_v8 }
 0x23f   :  { %v2673_v1 = vmul.f32 0.5, %v2609_v45  ;;  %1793 = vmatmul.f32.gmra.mxu0 %v4390_v15  ;;  %v4393_v15 = vld [vmem:[#allocation20_spill] sm:$0xff] }
 0x240   :  { %v1497_v11 = vpop.f32.mrf.mxu2 }
 0x241   :  { %2737 = vst [vmem:[#allocation2 + $0x140] sm:$0xff] %v2673_v1  ;;  %v1256_v24 = vpop.f32.mrf.mxu1  ;;  %v1698_v53 = vpop.f32.mrf.mxu3 }
 0x242   :  { %v1257_v2 = vadd.f32 %v1256_v24, %v1108_v41  ;;  %v3973_v6 = vadd.f32 %v1698_v53, %v1497_v11 }
 0x244   :  { %v2825_v16 = vpop.eup %2824  ;;  %v2485_v58 = vmul.f32 0.5, %v1257_v2  ;;  %v1111_v23 = vpop.f32.mrf.mxu0  ;;  %1981 = vmatmul.f32.gmra.mxu1 %v4391_v28 }
 0x245   :  { %v2611_v30 = vadd.f32 1.0, %v2825_v16  ;;  %2192 = vmatmul.f32.gmra.mxu2 %v3146_v21  ;;  %v1112_v22 = vadd.f32 %v1111_v23, %v3765_v13  ;;  %v4394_v13 = vld [vmem:[#allocation21_spill] sm:$0xff] }
 0x246   :  { %2826 = vtanh.f32 %v2485_v58  ;;  %2341 = vmatmul.f32.gmra.mxu3 %v3146_v21 }
 0x247   :  { %v2675_v8 = vmul.f32 0.5, %v2611_v30  ;;  %1798 = vmatmul.f32.gmra.mxu0 %v4392_v27 }
 0x248   :  { %v1505_v17 = vpop.f32.mrf.mxu2 }
 0x249   :  { %2739 = vst [vmem:[#allocation2 + $0x150] sm:$0xff] %v2675_v8  ;;  %v1260_v59 = vpop.f32.mrf.mxu1  ;;  %v1702_v43 = vpop.f32.mrf.mxu3  ;;  %v4395_v8 = vld [vmem:[#allocation22_spill] sm:$0xff] }
 0x24a   :  { %v1261_v51 = vadd.f32 %v1260_v59, %v1112_v22  ;;  %v3980_v38 = vadd.f32 %v1702_v43, %v1505_v17 }
 0x24c   :  { %v2827_v54 = vpop.eup %2826  ;;  %v2487_v45 = vmul.f32 0.5, %v1261_v51  ;;  %v1115_v1 = vpop.f32.mrf.mxu0  ;;  %1987 = vmatmul.f32.gmra.mxu1 %v4393_v15 }
 0x24d   :  { %v2613_v41 = vadd.f32 1.0, %v2827_v54  ;;  %2196 = vmatmul.f32.gmra.mxu2 %v3171_v37  ;;  %v1116_v24 = vadd.f32 %v1115_v1, %v3771_v57  ;;  %v4396_v57 = vld [vmem:[#allocation23_spill] sm:$0xff] }
 0x24e   :  { %2828 = vtanh.f32 %v2487_v45  ;;  %2345 = vmatmul.f32.gmra.mxu3 %v3171_v37 }
 0x24f   :  { %v2677_v21 = vmul.f32 0.5, %v2613_v41  ;;  %1803 = vmatmul.f32.gmra.mxu0 %v4394_v13  ;;  %v4397_v41 = vld [vmem:[#allocation24_spill] sm:$0xff] }
 0x250   :  { %v1513_v2 = vpop.f32.mrf.mxu2 }
 0x251   :  { %2741 = vst [vmem:[#allocation2 + $0x160] sm:$0xff] %v2677_v21  ;;  %v1264_v11 = vpop.f32.mrf.mxu1  ;;  %v1706_v16 = vpop.f32.mrf.mxu3 }
 0x252   :  { %v1265_v53 = vadd.f32 %v1264_v11, %v1116_v24  ;;  %v3987_v58 = vadd.f32 %v1706_v16, %v1513_v2 }
 0x254   :  { %v2829_v23 = vpop.eup %2828  ;;  %v2489_v28 = vmul.f32 0.5, %v1265_v53  ;;  %v1119_v30 = vpop.f32.mrf.mxu0  ;;  %1993 = vmatmul.f32.gmra.mxu1 %v4395_v8  ;;  %v4399_v8 = vld [vmem:[#allocation26_spill] sm:$0xff] }
 0x255   :  { %v2615_v27 = vadd.f32 1.0, %v2829_v23  ;;  %2200 = vmatmul.f32.gmra.mxu2 %v3191_v46  ;;  %v1120_v22 = vadd.f32 %v1119_v30, %v3777_v3  ;;  %v4398_v3 = vld [vmem:[#allocation25_spill] sm:$0xff] }
 0x256   :  { %2830 = vtanh.f32 %v2489_v28  ;;  %2349 = vmatmul.f32.gmra.mxu3 %v3191_v46 }
 0x257   :  { %v2679_v37 = vmul.f32 0.5, %v2615_v27  ;;  %1808 = vmatmul.f32.gmra.mxu0 %v4396_v57 }
 0x258   :  { %v1521_v17 = vpop.f32.mrf.mxu2 }
 0x259   :  { %2743 = vst [vmem:[#allocation2 + $0x170] sm:$0xff] %v2679_v37  ;;  %v1268_v59 = vpop.f32.mrf.mxu1  ;;  %v1710_v43 = vpop.f32.mrf.mxu3 }
 0x25a   :  { %v1269_v51 = vadd.f32 %v1268_v59, %v1120_v22  ;;  %v3994_v54 = vadd.f32 %v1710_v43, %v1521_v17 }
 0x25c   :  { %v2831_v45 = vpop.eup %2830  ;;  %v2491_v1 = vmul.f32 0.5, %v1269_v51  ;;  %v1123_v15 = vpop.f32.mrf.mxu0  ;;  %1999 = vmatmul.f32.gmra.mxu1 %v4397_v41 }
 0x25d   :  { %v2617_v21 = vadd.f32 1.0, %v2831_v45  ;;  %2204 = vmatmul.f32.gmra.mxu2 %v3211_v62  ;;  %v1124_v13 = vadd.f32 %v1123_v15, %v3783_v47  ;;  %v4400_v47 = vld [vmem:[#allocation27_spill] sm:$0xff]  ;;  %v4401_v15 = vld [vmem:[#allocation28_spill] sm:$0xff] }
 0x25e   :  { %2832 = vtanh.f32 %v2491_v1  ;;  %2353 = vmatmul.f32.gmra.mxu3 %v3211_v62 }
 0x25f   :  { %v2681_v46 = vmul.f32 0.5, %v2617_v21  ;;  %1813 = vmatmul.f32.gmra.mxu0 %v4398_v3 }
 0x260   :  { %v1529_v11 = vpop.f32.mrf.mxu2 }
 0x261   :  { %2745 = vst [vmem:[#allocation2 + $0x180] sm:$0xff] %v2681_v46  ;;  %v1272_v24 = vpop.f32.mrf.mxu1  ;;  %v1714_v53 = vpop.f32.mrf.mxu3 }
 0x262   :  { %v1273_v2 = vadd.f32 %v1272_v24, %v1124_v13  ;;  %v4001_v16 = vadd.f32 %v1714_v53, %v1529_v11 }
 0x264   :  { %v2833_v23 = vpop.eup %2832  ;;  %v2493_v28 = vmul.f32 0.5, %v1273_v2  ;;  %v1127_v30 = vpop.f32.mrf.mxu0  ;;  %2005 = vmatmul.f32.gmra.mxu1 %v4399_v8 }
 0x265   :  { %v2619_v27 = vadd.f32 1.0, %v2833_v23  ;;  %2208 = vmatmul.f32.gmra.mxu2 %v3231_v14  ;;  %v1128_v37 = vadd.f32 %v1127_v30, %v3789_v42  ;;  %v4402_v42 = vld [vmem:[#allocation29_spill] sm:$0xff] }
 0x266   :  { %2834 = vtanh.f32 %v2493_v28  ;;  %2357 = vmatmul.f32.gmra.mxu3 %v3231_v14  ;;  %v4403_v28 = vld [vmem:[#allocation30_spill] sm:$0xff] }
 0x267   :  { %v2683_v62 = vmul.f32 0.5, %v2619_v27  ;;  %1818 = vmatmul.f32.gmra.mxu0 %v4400_v47 }
 0x268   :  { %v1537_v22 = vpop.f32.mrf.mxu2 }
 0x269   :  { %2747 = vst [vmem:[#allocation2 + $0x190] sm:$0xff] %v2683_v62  ;;  %v1276_v57 = vpop.f32.mrf.mxu1  ;;  %v1718_v17 = vpop.f32.mrf.mxu3 }
 0x26a   :  { %v1277_v59 = vadd.f32 %v1276_v57, %v1128_v37  ;;  %v4008_v51 = vadd.f32 %v1718_v17, %v1537_v22 }
 0x26c   :  { %v2835_v43 = vpop.eup %2834  ;;  %v2495_v45 = vmul.f32 0.5, %v1277_v59  ;;  %v1131_v1 = vpop.f32.mrf.mxu0  ;;  %2011 = vmatmul.f32.gmra.mxu1 %v4401_v15 }
 0x26d   :  { %v2621_v41 = vadd.f32 1.0, %v2835_v43  ;;  %2212 = vmatmul.f32.gmra.mxu2 %v3251_v39  ;;  %v1132_v21 = vadd.f32 %v1131_v1, %v3795_v49  ;;  %v4404_v49 = vld [vmem:[#allocation31_spill] sm:$0xff]  ;;  %v4405_v43 = vld [vmem:[#allocation32_spill] sm:$0xff] }
 0x26e   :  { %2836 = vtanh.f32 %v2495_v45  ;;  %2361 = vmatmul.f32.gmra.mxu3 %v3251_v39 }
 0x26f   :  { %v2685_v14 = vmul.f32 0.5, %v2621_v41  ;;  %1823 = vmatmul.f32.gmra.mxu0 %v4402_v42 }
 0x270   :  { %v1545_v3 = vpop.f32.mrf.mxu2 }
 0x271   :  { %2749 = vst [vmem:[#allocation2 + $0x1a0] sm:$0xff] %v2685_v14  ;;  %v1280_v46 = vpop.f32.mrf.mxu1  ;;  %v1722_v24 = vpop.f32.mrf.mxu3 }
 0x272   :  { %v1281_v13 = vadd.f32 %v1280_v46, %v1132_v21  ;;  %v4015_v11 = vadd.f32 %v1722_v24, %v1545_v3  ;;  %v4407_v24 = vld [vmem:[#allocation34_spill] sm:$0xff] }
 0x274   :  { %v2837_v2 = vpop.eup %2836  ;;  %v2497_v53 = vmul.f32 0.5, %v1281_v13  ;;  %v1135_v23 = vpop.f32.mrf.mxu0  ;;  %2017 = vmatmul.f32.gmra.mxu1 %v4403_v28 }
 0x275   :  { %v2623_v30 = vadd.f32 1.0, %v2837_v2  ;;  %2216 = vmatmul.f32.gmra.mxu2 %v3271_v9  ;;  %v1136_v8 = vadd.f32 %v1135_v23, %v3801_v56  ;;  %v4406_v56 = vld [vmem:[#allocation33_spill] sm:$0xff] }
 0x276   :  { %2838 = vtanh.f32 %v2497_v53  ;;  %2365 = vmatmul.f32.gmra.mxu3 %v3271_v9  ;;  %v4409_v53 = vld [vmem:[#allocation99_spill] sm:$0xff] }
 0x277   :  { %v2687_v39 = vmul.f32 0.5, %v2623_v30  ;;  %1828 = vmatmul.f32.gmra.mxu0 %v4404_v49 }
 0x278   :  { %v1553_v62 = vpop.f32.mrf.mxu2 }
 0x279   :  { %2751 = vst [vmem:[#allocation2 + $0x1b0] sm:$0xff] %v2687_v39  ;;  %v1284_v27 = vpop.f32.mrf.mxu1  ;;  %v1726_v37 = vpop.f32.mrf.mxu3 }
 0x27a   :  { %v1285_v47 = vadd.f32 %v1284_v27, %v1136_v8  ;;  %v4022_v57 = vadd.f32 %v1726_v37, %v1553_v62  ;;  %v4410_v37 = vld [vmem:[#allocation36_spill] sm:$0xff] }
 0x27c   :  { %v2839_v22 = vpop.eup %2838  ;;  %v2499_v59 = vmul.f32 0.5, %v1285_v47  ;;  %v1139_v17 = vpop.f32.mrf.mxu0  ;;  %2023 = vmatmul.f32.gmra.mxu1 %v4405_v43  ;;  %v4413_v43 = vld [vmem:[#allocation100_spill] sm:$0xff] }
 0x27d   :  { %v2625_v45 = vadd.f32 1.0, %v2839_v22  ;;  %2220 = vmatmul.f32.gmra.mxu2 %v3291_v26  ;;  %v1140_v1 = vadd.f32 %v1139_v17, %v3807_v63  ;;  %v4408_v63 = vld [vmem:[#allocation35_spill] sm:$0xff]  ;;  %v4412_v17 = vld [vmem:[#allocation38_spill] sm:$0xff] }
 0x27e   :  { %2840 = vtanh.f32 %v2499_v59  ;;  %2369 = vmatmul.f32.gmra.mxu3 %v3291_v26 }
 0x27f   :  { %v2689_v9 = vmul.f32 0.5, %v2625_v45  ;;  %1833 = vmatmul.f32.gmra.mxu0 %v4406_v56 }
 0x280   :  { %v1561_v41 = vpop.f32.mrf.mxu2 }
 0x281   :  { %2753 = vst [vmem:[#allocation2 + $0x1c0] sm:$0xff] %v2689_v9  ;;  %v1288_v15 = vpop.f32.mrf.mxu1  ;;  %v1730_v42 = vpop.f32.mrf.mxu3 }
 0x282   :  { %v1289_v14 = vadd.f32 %v1288_v15, %v1140_v1  ;;  %v4029_v21 = vadd.f32 %v1730_v42, %v1561_v41 }
 0x284   :  { %v2841_v46 = vpop.eup %2840  ;;  %v2501_v3 = vmul.f32 0.5, %v1289_v14  ;;  %v1143_v13 = vpop.f32.mrf.mxu0  ;;  %2029 = vmatmul.f32.gmra.mxu1 %v4407_v24  ;;  %v4415_v24 = vld [vmem:[#allocation40_spill] sm:$0xff] }
 0x285   :  { %v2627_v2 = vadd.f32 1.0, %v2841_v46  ;;  %2224 = vmatmul.f32.gmra.mxu2 %v3321_v5  ;;  %v1144_v23 = vadd.f32 %v1143_v13, %v4409_v53  ;;  %v4414_v46 = vld [vmem:[#allocation39_spill] sm:$0xff] }
 0x286   :  { %2842 = vtanh.f32 %v2501_v3  ;;  %2373 = vmatmul.f32.gmra.mxu3 %v3321_v5  ;;  %v4411_v5 = vld [vmem:[#allocation37_spill] sm:$0xff] }
 0x287   :  { %v2691_v26 = vmul.f32 0.5, %v2627_v2  ;;  %1838 = vmatmul.f32.gmra.mxu0 %v4408_v63  ;;  %v4417_v63 = vld [vmem:[#allocation45_spill] sm:$0xff] }
 0x288   :  { %v1569_v30 = vpop.f32.mrf.mxu2 }
 0x289   :  { %2755 = vst [vmem:[#allocation2 + $0x1d0] sm:$0xff] %v2691_v26  ;;  %v1292_v28 = vpop.f32.mrf.mxu1  ;;  %v1734_v49 = vpop.f32.mrf.mxu3  ;;  %v4416_v26 = vld [vmem:[#allocation41_spill] sm:$0xff] }
 0x28a   :  { %v1293_v39 = vadd.f32 %v1292_v28, %v1144_v23  ;;  %v4036_v8 = vadd.f32 %v1734_v49, %v1569_v30 }
 0x28c   :  { %v2843_v27 = vpop.eup %2842  ;;  %v2503_v62 = vmul.f32 0.5, %v1293_v39  ;;  %v1764_v47 = vpop.f32.mrf.mxu0  ;;  %2035 = vmatmul.f32.gmra.mxu1 %v4410_v37 }
 0x28d   :  { %v2629_v22 = vadd.f32 1.0, %v2843_v27  ;;  %2228 = vmatmul.f32.gmra.mxu2 %v4411_v5  ;;  %v1765_v45 = vadd.f32 %v1764_v47, %v4413_v43  ;;  %v4418_v47 = vld [vmem:[#allocation42_spill] sm:$0xff] }
 0x28e   :  { %2844 = vtanh.f32 %v2503_v62  ;;  %2377 = vmatmul.f32.gmra.mxu3 %v4411_v5 }
 0x28f   :  { %v2693_v59 = vmul.f32 0.5, %v2629_v22  ;;  %1843 = vmatmul.f32.gmra.mxu0 %v4412_v17  ;;  %v4419_v22 = vld [vmem:[#allocation44_spill] sm:$0xff] }
 0x290   :  { %v2165_v56 = vpop.f32.mrf.mxu2 }
 0x291   :  { %2757 = vst [vmem:[#allocation2 + $0x1e0] sm:$0xff] %v2693_v59  ;;  %v1946_v9 = vpop.f32.mrf.mxu1  ;;  %v2314_v15 = vpop.f32.mrf.mxu3  ;;  %v4420_v59 = vld [vmem:[#allocation51_spill] sm:$0xff] }
 0x292   :  { %v1947_v1 = vadd.f32 %v1946_v9, %v1765_v45 }
 0x294   :  { %v2845_v41 = vpop.eup %2844  ;;  %v1769_v14 = vpop.f32.mrf.mxu0  ;;  %v2166_v42 = vadd.f32 %v2165_v56, %v1947_v1  ;;  %2041 = vmatmul.f32.gmra.mxu1 %v4414_v46  ;;  %v4421_v46 = vld [vmem:[#allocation46_spill] sm:$0xff] }
 0x295   :  { %v2631_v3 = vadd.f32 1.0, %v2845_v41  ;;  %2232 = vmatmul.f32.gmra.mxu2 %v4415_v24  ;;  %v1770_v53 = vadd.f32 %v1769_v14, %v4417_v63 }
 0x296   :  { %v2315_v13 = vadd.f32 %v2314_v15, %v2166_v42  ;;  %2381 = vmatmul.f32.gmra.mxu3 %v4415_v24 }
 0x297   :  { %v2695_v2 = vmul.f32 0.5, %v2631_v3  ;;  %1848 = vmatmul.f32.gmra.mxu0 %v4416_v26 }
 0x298   :  { %v2442_v23 = vmul.f32 0.5, %v2315_v13  ;;  %v2169_v30 = vpop.f32.mrf.mxu2 }
 0x299   :  { %2759 = vst [vmem:[#allocation2 + $0x1f0] sm:$0xff] %v2695_v2  ;;  %v1952_v28 = vpop.f32.mrf.mxu1  ;;  %v2318_v49 = vpop.f32.mrf.mxu3 }
 0x29a   :  { %2846 = vtanh.f32 %v2442_v23  ;;  %v1953_v39 = vadd.f32 %v1952_v28, %v1770_v53 }
 0x29c   :  { %v1774_v27 = vpop.f32.mrf.mxu0  ;;  %v2170_v62 = vadd.f32 %v2169_v30, %v1953_v39  ;;  %2047 = vmatmul.f32.gmra.mxu1 %v4418_v47 }
 0x29d   :  { %2236 = vmatmul.f32.gmra.mxu2 %v4346_v18  ;;  %v1775_v17 = vadd.f32 %v1774_v27, %v4420_v59  ;;  %v4423_v27 = vld [vmem:[#allocation50_spill] sm:$0xff] }
 0x29e   :  { %v2319_v37 = vadd.f32 %v2318_v49, %v2170_v62  ;;  %2385 = vmatmul.f32.gmra.mxu3 %v4346_v18  ;;  %v4422_v18 = vld [vmem:[#allocation48_spill] sm:$0xff] }
 0x29f   :  { %1853 = vmatmul.f32.gmra.mxu0 %v4419_v22 }
 0x2a0   :  { %v2847_v5 = vpop.eup %2846  ;;  %v2444_v43 = vmul.f32 0.5, %v2319_v37  ;;  %v2173_v56 = vpop.f32.mrf.mxu2 }
 0x2a1   :  { %v2570_v45 = vadd.f32 1.0, %v2847_v5  ;;  %v1958_v9 = vpop.f32.mrf.mxu1  ;;  %v2322_v15 = vpop.f32.mrf.mxu3 }
 0x2a2   :  { %2848 = vtanh.f32 %v2444_v43  ;;  %v1959_v1 = vadd.f32 %v1958_v9, %v1775_v17 }
 0x2a3   :  { %v2634_v41 = vmul.f32 0.5, %v2570_v45 }
 0x2a4   :  { %v1779_v14 = vpop.f32.mrf.mxu0  ;;  %v2174_v42 = vadd.f32 %v2173_v56, %v1959_v1  ;;  %2053 = vmatmul.f32.gmra.mxu1 %v4421_v46  ;;  %v4425_v1 = vld [vmem:[#allocation54_spill] sm:$0xff] }
 0x2a5   :  { %2698 = vst [vmem:[#allocation2 + $0x8] sm:$0xff] %v2634_v41  ;;  %2240 = vmatmul.f32.gmra.mxu2 %v4350_v7  ;;  %v1780_v24 = vadd.f32 %v1779_v14, %v3840_v33 }
 0x2a6   :  { %v2323_v3 = vadd.f32 %v2322_v15, %v2174_v42  ;;  %2389 = vmatmul.f32.gmra.mxu3 %v4350_v7  ;;  %v4424_v7 = vld [vmem:[#allocation52_spill] sm:$0xff] }
 0x2a7   :  { %1858 = vmatmul.f32.gmra.mxu0 %v4422_v18 }
 0x2a8   :  { %v2849_v13 = vpop.eup %2848  ;;  %v2446_v2 = vmul.f32 0.5, %v2323_v3  ;;  %v2177_v53 = vpop.f32.mrf.mxu2 }
 0x2a9   :  { %v2572_v26 = vadd.f32 1.0, %v2849_v13  ;;  %v1964_v63 = vpop.f32.mrf.mxu1  ;;  %v2326_v28 = vpop.f32.mrf.mxu3 }
 0x2aa   :  { %2850 = vtanh.f32 %v2446_v2  ;;  %v1965_v23 = vadd.f32 %v1964_v63, %v1780_v24  ;;  %v4427_v63 = vld [vmem:[#allocation58_spill] sm:$0xff] }
 0x2ab   :  { %v2636_v30 = vmul.f32 0.5, %v2572_v26 }
 0x2ac   :  { %v1784_v39 = vpop.f32.mrf.mxu0  ;;  %v2178_v49 = vadd.f32 %v2177_v53, %v1965_v23  ;;  %2059 = vmatmul.f32.gmra.mxu1 %v4423_v27  ;;  %v4429_v23 = vld [vmem:[#allocation49_spill] sm:$0xff] }
 0x2ad   :  { %2700 = vst [vmem:[#allocation2 + $0x18] sm:$0xff] %v2636_v30  ;;  %2244 = vmatmul.f32.gmra.mxu2 %v3428_v20  ;;  %v1785_v47 = vadd.f32 %v1784_v39, %v3847_v32 }
 0x2ae   :  { %v2327_v62 = vadd.f32 %v2326_v28, %v2178_v49  ;;  %2393 = vmatmul.f32.gmra.mxu3 %v3428_v20  ;;  %v4426_v20 = vld [vmem:[#allocation56_spill] sm:$0xff] }
 0x2af   :  { %1863 = vmatmul.f32.gmra.mxu0 %v4424_v7 }
 0x2b0   :  { %v2851_v33 = vpop.eup %2850  ;;  %v2448_v37 = vmul.f32 0.5, %v2327_v62  ;;  %v2181_v59 = vpop.f32.mrf.mxu2 }
 0x2b1   :  { %v2574_v22 = vadd.f32 1.0, %v2851_v33  ;;  %v1970_v5 = vpop.f32.mrf.mxu1  ;;  %v2330_v43 = vpop.f32.mrf.mxu3 }
 0x2b2   :  { %2852 = vtanh.f32 %v2448_v37  ;;  %v1971_v17 = vadd.f32 %v1970_v5, %v1785_v47 }
 0x2b3   :  { %v2638_v45 = vmul.f32 0.5, %v2574_v22  ;;  %v4430_v22 = vld [vmem:[#allocation62_spill] sm:$0xff] }
 0x2b4   :  { %v1789_v9 = vpop.f32.mrf.mxu0  ;;  %v2182_v56 = vadd.f32 %v2181_v59, %v1971_v17  ;;  %2065 = vmatmul.f32.gmra.mxu1 %v4425_v1  ;;  %v4432_v59 = vld [vmem:[#allocation64_spill] sm:$0xff] }
 0x2b5   :  { %2702 = vst [vmem:[#allocation2 + $0x28] sm:$0xff] %v2638_v45  ;;  %2248 = vmatmul.f32.gmra.mxu2 %v3450_v60  ;;  %v1790_v41 = vadd.f32 %v1789_v9, %v3854_v31 }
 0x2b6   :  { %v2331_v15 = vadd.f32 %v2330_v43, %v2182_v56  ;;  %2397 = vmatmul.f32.gmra.mxu3 %v3450_v60  ;;  %v4428_v60 = vld [vmem:[#allocation60_spill] sm:$0xff]  ;;  %v4433_v43 = vld [vmem:[#allocation43_spill] sm:$0xff] }
 0x2b7   :  { %1868 = vmatmul.f32.gmra.mxu0 %v4426_v20 }
 0x2b8   :  { %v2853_v32 = vpop.eup %2852  ;;  %v2450_v14 = vmul.f32 0.5, %v2331_v15  ;;  %v2185_v3 = vpop.f32.mrf.mxu2 }
 0x2b9   :  { %v2576_v42 = vadd.f32 1.0, %v2853_v32  ;;  %v1976_v46 = vpop.f32.mrf.mxu1  ;;  %v2334_v13 = vpop.f32.mrf.mxu3 }
 0x2ba   :  { %2854 = vtanh.f32 %v2450_v14  ;;  %v1977_v18 = vadd.f32 %v1976_v46, %v1790_v41  ;;  %v4434_v46 = vld [vmem:[#allocation65_spill] sm:$0xff] }
 0x2bb   :  { %v2640_v24 = vmul.f32 0.5, %v2576_v42 }
 0x2bc   :  { %v1794_v2 = vpop.f32.mrf.mxu0  ;;  %v2186_v26 = vadd.f32 %v2185_v3, %v1977_v18  ;;  %2071 = vmatmul.f32.gmra.mxu1 %v4427_v63  ;;  %v4435_v18 = vld [vmem:[#allocation66_spill] sm:$0xff] }
 0x2bd   :  { %2704 = vst [vmem:[#allocation2 + $0x38] sm:$0xff] %v2640_v24  ;;  %2252 = vmatmul.f32.gmra.mxu2 %v3472_v61  ;;  %v1795_v28 = vadd.f32 %v1794_v2, %v4429_v23  ;;  %v4437_v2 = vld [vmem:[#allocation55_spill] sm:$0xff] }
 0x2be   :  { %v2335_v53 = vadd.f32 %v2334_v13, %v2186_v26  ;;  %2401 = vmatmul.f32.gmra.mxu3 %v3472_v61  ;;  %v4431_v61 = vld [vmem:[#allocation63_spill] sm:$0xff] }
 0x2bf   :  { %1873 = vmatmul.f32.gmra.mxu0 %v4428_v60  ;;  %v4436_v13 = vld [vmem:[#allocation67_spill] sm:$0xff] }
 0x2c0   :  { %v2855_v31 = vpop.eup %2854  ;;  %v2452_v30 = vmul.f32 0.5, %v2335_v53  ;;  %v2189_v27 = vpop.f32.mrf.mxu2 }
 0x2c1   :  { %v2578_v39 = vadd.f32 1.0, %v2855_v31  ;;  %v1982_v49 = vpop.f32.mrf.mxu1  ;;  %v2338_v7 = vpop.f32.mrf.mxu3 }
 0x2c2   :  { %2856 = vtanh.f32 %v2452_v30  ;;  %v1983_v62 = vadd.f32 %v1982_v49, %v1795_v28 }
 0x2c3   :  { %v2642_v33 = vmul.f32 0.5, %v2578_v39 }
 0x2c4   :  { %v1799_v47 = vpop.f32.mrf.mxu0  ;;  %v2190_v37 = vadd.f32 %v2189_v27, %v1983_v62  ;;  %2077 = vmatmul.f32.gmra.mxu1 %v4430_v22  ;;  %v4438_v27 = vld [vmem:[#allocation68_spill] sm:$0xff] }
 0x2c5   :  { %2706 = vst [vmem:[#allocation2 + $0x48] sm:$0xff] %v2642_v33  ;;  %2256 = vmatmul.f32.gmra.mxu2 %v4431_v61  ;;  %v1800_v45 = vadd.f32 %v1799_v47, %v4433_v43  ;;  %v4440_v33 = vld [vmem:[#allocation70_spill] sm:$0xff] }
 0x2c6   :  { %v2339_v5 = vadd.f32 %v2338_v7, %v2190_v37  ;;  %2405 = vmatmul.f32.gmra.mxu3 %v4431_v61  ;;  %v4439_v7 = vld [vmem:[#allocation69_spill] sm:$0xff] }
 0x2c7   :  { %1878 = vmatmul.f32.gmra.mxu0 %v4432_v59  ;;  %v4441_v37 = vld [vmem:[#allocation53_spill] sm:$0xff] }
 0x2c8   :  { %v2857_v17 = vpop.eup %2856  ;;  %v2454_v9 = vmul.f32 0.5, %v2339_v5  ;;  %v2193_v15 = vpop.f32.mrf.mxu2 }
 0x2c9   :  { %v2580_v56 = vadd.f32 1.0, %v2857_v17  ;;  %v1988_v1 = vpop.f32.mrf.mxu1  ;;  %v2342_v32 = vpop.f32.mrf.mxu3 }
 0x2ca   :  { %2858 = vtanh.f32 %v2454_v9  ;;  %v1989_v20 = vadd.f32 %v1988_v1, %v1800_v45 }
 0x2cb   :  { %v2644_v41 = vmul.f32 0.5, %v2580_v56 }
 0x2cc   :  { %v1804_v14 = vpop.f32.mrf.mxu0  ;;  %v2194_v42 = vadd.f32 %v2193_v15, %v1989_v20  ;;  %2083 = vmatmul.f32.gmra.mxu1 %v4434_v46  ;;  %v4442_v15 = vld [vmem:[#allocation72_spill] sm:$0xff] }
 0x2cd   :  { %2708 = vst [vmem:[#allocation2 + $0x58] sm:$0xff] %v2644_v41  ;;  %2260 = vmatmul.f32.gmra.mxu2 %v4435_v18  ;;  %v1805_v26 = vadd.f32 %v1804_v14, %v4437_v2  ;;  %v4444_v14 = vld [vmem:[#allocation47_spill] sm:$0xff] }
 0x2ce   :  { %v2343_v3 = vadd.f32 %v2342_v32, %v2194_v42  ;;  %2409 = vmatmul.f32.gmra.mxu3 %v4435_v18  ;;  %v4443_v32 = vld [vmem:[#allocation75_spill] sm:$0xff] }
 0x2cf   :  { %1883 = vmatmul.f32.gmra.mxu0 %v4436_v13 }
 0x2d0   :  { %v2859_v24 = vpop.eup %2858  ;;  %v2456_v63 = vmul.f32 0.5, %v2343_v3  ;;  %v2197_v31 = vpop.f32.mrf.mxu2 }
 0x2d1   :  { %v2582_v53 = vadd.f32 1.0, %v2859_v24  ;;  %v1994_v60 = vpop.f32.mrf.mxu1  ;;  %v2346_v28 = vpop.f32.mrf.mxu3 }
 0x2d2   :  { %2860 = vtanh.f32 %v2456_v63  ;;  %v1995_v23 = vadd.f32 %v1994_v60, %v1805_v26  ;;  %v4445_v60 = vld [vmem:[#allocation77_spill] sm:$0xff] }
 0x2d3   :  { %v2646_v30 = vmul.f32 0.5, %v2582_v53 }
 0x2d4   :  { %v1809_v39 = vpop.f32.mrf.mxu0  ;;  %v2198_v49 = vadd.f32 %v2197_v31, %v1995_v23  ;;  %2089 = vmatmul.f32.gmra.mxu1 %v4438_v27 }
 0x2d5   :  { %2710 = vst [vmem:[#allocation2 + $0x68] sm:$0xff] %v2646_v30  ;;  %2264 = vmatmul.f32.gmra.mxu2 %v4439_v7  ;;  %v1810_v22 = vadd.f32 %v1809_v39, %v4441_v37 }
 0x2d6   :  { %v2347_v62 = vadd.f32 %v2346_v28, %v2198_v49  ;;  %2413 = vmatmul.f32.gmra.mxu3 %v4439_v7  ;;  %v4447_v28 = vld [vmem:[#allocation59_spill] sm:$0xff] }
 0x2d7   :  { %1888 = vmatmul.f32.gmra.mxu0 %v4440_v33 }
 0x2d8   :  { %v2861_v47 = vpop.eup %2860  ;;  %v2458_v5 = vmul.f32 0.5, %v2347_v62  ;;  %v2201_v17 = vpop.f32.mrf.mxu2 }
 0x2d9   :  { %v2584_v61 = vadd.f32 1.0, %v2861_v47  ;;  %v2000_v59 = vpop.f32.mrf.mxu1  ;;  %v2350_v45 = vpop.f32.mrf.mxu3 }
 0x2da   :  { %2862 = vtanh.f32 %v2458_v5  ;;  %v2001_v43 = vadd.f32 %v2000_v59, %v1810_v22  ;;  %v4448_v5 = vld [vmem:[#allocation82_spill] sm:$0xff] }
 0x2db   :  { %v2648_v9 = vmul.f32 0.5, %v2584_v61 }
 0x2dc   :  { %v1814_v56 = vpop.f32.mrf.mxu0  ;;  %v2202_v1 = vadd.f32 %v2201_v17, %v2001_v43  ;;  %2095 = vmatmul.f32.gmra.mxu1 %v4442_v15 }
 0x2dd   :  { %2712 = vst [vmem:[#allocation2 + $0x78] sm:$0xff] %v2648_v9  ;;  %2268 = vmatmul.f32.gmra.mxu2 %v4367_v12  ;;  %v1815_v42 = vadd.f32 %v1814_v56, %v4444_v14  ;;  %v4450_v14 = vld [vmem:[#allocation86_spill] sm:$0xff] }
 0x2de   :  { %v2351_v20 = vadd.f32 %v2350_v45, %v2202_v1  ;;  %2417 = vmatmul.f32.gmra.mxu3 %v4367_v12  ;;  %v4446_v12 = vld [vmem:[#allocation80_spill] sm:$0xff] }
 0x2df   :  { %1893 = vmatmul.f32.gmra.mxu0 %v4443_v32 }
 0x2e0   :  { %v2863_v41 = vpop.eup %2862  ;;  %v2460_v46 = vmul.f32 0.5, %v2351_v20  ;;  %v2205_v13 = vpop.f32.mrf.mxu2 }
 0x2e1   :  { %v2586_v3 = vadd.f32 1.0, %v2863_v41  ;;  %v2006_v18 = vpop.f32.mrf.mxu1  ;;  %v2354_v2 = vpop.f32.mrf.mxu3 }
 0x2e2   :  { %2864 = vtanh.f32 %v2460_v46  ;;  %v2007_v24 = vadd.f32 %v2006_v18, %v1815_v42 }
 0x2e3   :  { %v2650_v26 = vmul.f32 0.5, %v2586_v3 }
 0x2e4   :  { %v1819_v63 = vpop.f32.mrf.mxu0  ;;  %v2206_v53 = vadd.f32 %v2205_v13, %v2007_v24  ;;  %2101 = vmatmul.f32.gmra.mxu1 %v4445_v60 }
 0x2e5   :  { %2714 = vst [vmem:[#allocation2 + $0x88] sm:$0xff] %v2650_v26  ;;  %2272 = vmatmul.f32.gmra.mxu2 %v4371_v48  ;;  %v1820_v30 = vadd.f32 %v1819_v63, %v4447_v28 }
 0x2e6   :  { %v2355_v31 = vadd.f32 %v2354_v2, %v2206_v53  ;;  %2421 = vmatmul.f32.gmra.mxu3 %v4371_v48  ;;  %v4449_v48 = vld [vmem:[#allocation84_spill] sm:$0xff] }
 0x2e7   :  { %1898 = vmatmul.f32.gmra.mxu0 %v4446_v12 }
 0x2e8   :  { %v2865_v23 = vpop.eup %2864  ;;  %v2462_v39 = vmul.f32 0.5, %v2355_v31  ;;  %v2209_v62 = vpop.f32.mrf.mxu2  ;;  %v4452_v31 = vld [vmem:[#allocation90_spill] sm:$0xff] }
 0x2e9   :  { %v2588_v49 = vadd.f32 1.0, %v2865_v23  ;;  %v2012_v27 = vpop.f32.mrf.mxu1  ;;  %v2358_v33 = vpop.f32.mrf.mxu3 }
 0x2ea   :  { %2866 = vtanh.f32 %v2462_v39  ;;  %v2013_v7 = vadd.f32 %v2012_v27, %v1820_v30 }
 0x2eb   :  { %v2652_v47 = vmul.f32 0.5, %v2588_v49 }
 0x2ec   :  { %v1824_v37 = vpop.f32.mrf.mxu0  ;;  %v2210_v22 = vadd.f32 %v2209_v62, %v2013_v7  ;;  %2107 = vmatmul.f32.gmra.mxu1 %v4448_v5 }
 0x2ed   :  { %2716 = vst [vmem:[#allocation2 + $0x98] sm:$0xff] %v2652_v47  ;;  %2276 = vmatmul.f32.gmra.mxu2 %v3616_v4  ;;  %v1825_v17 = vadd.f32 %v1824_v37, %v3903_v52  ;;  %v4454_v37 = vld [vmem:[#allocation94_spill] sm:$0xff] }
 0x2ee   :  { %v2359_v61 = vadd.f32 %v2358_v33, %v2210_v22  ;;  %2425 = vmatmul.f32.gmra.mxu3 %v3616_v4  ;;  %v4451_v4 = vld [vmem:[#allocation88_spill] sm:$0xff] }
 0x2ef   :  { %1903 = vmatmul.f32.gmra.mxu0 %v4449_v48 }
 0x2f0   :  { %v2867_v59 = vpop.eup %2866  ;;  %v2464_v43 = vmul.f32 0.5, %v2359_v61  ;;  %v2213_v56 = vpop.f32.mrf.mxu2 }
 0x2f1   :  { %v2590_v45 = vadd.f32 1.0, %v2867_v59  ;;  %v2018_v9 = vpop.f32.mrf.mxu1  ;;  %v2362_v15 = vpop.f32.mrf.mxu3 }
 0x2f2   :  { %2868 = vtanh.f32 %v2464_v43  ;;  %v2019_v1 = vadd.f32 %v2018_v9, %v1825_v17 }
 0x2f3   :  { %v2654_v20 = vmul.f32 0.5, %v2590_v45 }
 0x2f4   :  { %v1829_v32 = vpop.f32.mrf.mxu0  ;;  %v2214_v41 = vadd.f32 %v2213_v56, %v2019_v1  ;;  %2113 = vmatmul.f32.gmra.mxu1 %v4450_v14 }
 0x2f5   :  { %2718 = vst [vmem:[#allocation2 + $0xa8] sm:$0xff] %v2654_v20  ;;  %2280 = vmatmul.f32.gmra.mxu2 %v3638_v50  ;;  %v1830_v46 = vadd.f32 %v1829_v32, %v3910_v25 }
 0x2f6   :  { %v2363_v42 = vadd.f32 %v2362_v15, %v2214_v41  ;;  %2429 = vmatmul.f32.gmra.mxu3 %v3638_v50  ;;  %v4453_v50 = vld [vmem:[#allocation92_spill] sm:$0xff]  ;;  %v4456_v15 = vld [vmem:[#allocation98_spill] sm:$0xff] }
 0x2f7   :  { %1908 = vmatmul.f32.gmra.mxu0 %v4451_v4 }
 0x2f8   :  { %v2869_v52 = vpop.eup %2868  ;;  %v2466_v3 = vmul.f32 0.5, %v2363_v42  ;;  %v2217_v24 = vpop.f32.mrf.mxu2 }
 0x2f9   :  { %v2592_v18 = vadd.f32 1.0, %v2869_v52  ;;  %v2024_v13 = vpop.f32.mrf.mxu1  ;;  %v2366_v26 = vpop.f32.mrf.mxu3 }
 0x2fa   :  { %2870 = vtanh.f32 %v2466_v3  ;;  %v2025_v2 = vadd.f32 %v2024_v13, %v1830_v46 }
 0x2fb   :  { %v2656_v63 = vmul.f32 0.5, %v2592_v18 }
 0x2fc   :  { %v1834_v53 = vpop.f32.mrf.mxu0  ;;  %v2218_v60 = vadd.f32 %v2217_v24, %v2025_v2  ;;  %2119 = vmatmul.f32.gmra.mxu1 %v4452_v31 }
 0x2fd   :  { %2720 = vst [vmem:[#allocation2 + $0xb8] sm:$0xff] %v2656_v63  ;;  %2284 = vmatmul.f32.gmra.mxu2 %v3660_v34  ;;  %v1835_v23 = vadd.f32 %v1834_v53, %v3917_v0 }
 0x2fe   :  { %v2367_v12 = vadd.f32 %v2366_v26, %v2218_v60  ;;  %2433 = vmatmul.f32.gmra.mxu3 %v3660_v34  ;;  %v4455_v34 = vld [vmem:[#allocation96_spill] sm:$0xff] }
 0x2ff   :  { %1913 = vmatmul.f32.gmra.mxu0 %v4453_v50 }
 0x300   :  { %v2871_v25 = vpop.eup %2870  ;;  %v2468_v28 = vmul.f32 0.5, %v2367_v12  ;;  %v2221_v49 = vpop.f32.mrf.mxu2 }
 0x301   :  { %v2594_v30 = vadd.f32 1.0, %v2871_v25  ;;  %v2030_v39 = vpop.f32.mrf.mxu1  ;;  %v2370_v62 = vpop.f32.mrf.mxu3 }
 0x302   :  { %2872 = vtanh.f32 %v2468_v28  ;;  %v2031_v27 = vadd.f32 %v2030_v39, %v1835_v23 }
 0x303   :  { %v2658_v7 = vmul.f32 0.5, %v2594_v30 }
 0x304   :  { %v1839_v33 = vpop.f32.mrf.mxu0  ;;  %v2222_v47 = vadd.f32 %v2221_v49, %v2031_v27  ;;  %2125 = vmatmul.f32.gmra.mxu1 %v4454_v37 }
 0x305   :  { %2722 = vst [vmem:[#allocation2 + $0xc8] sm:$0xff] %v2658_v7  ;;  %2288 = vmatmul.f32.gmra.mxu2 %v3682_v55  ;;  %v1840_v5 = vadd.f32 %v1839_v33, %v3924_v36 }
 0x306   :  { %v2371_v22 = vadd.f32 %v2370_v62, %v2222_v47  ;;  %2437 = vmatmul.f32.gmra.mxu3 %v3682_v55 }
 0x307   :  { %1918 = vmatmul.f32.gmra.mxu0 %v4455_v34 }
 0x308   :  { %v2873_v0 = vpop.eup %2872  ;;  %v2470_v61 = vmul.f32 0.5, %v2371_v22  ;;  %v2225_v17 = vpop.f32.mrf.mxu2 }
 0x309   :  { %v2596_v48 = vadd.f32 1.0, %v2873_v0  ;;  %v2036_v59 = vpop.f32.mrf.mxu1  ;;  %v2374_v45 = vpop.f32.mrf.mxu3 }
 0x30a   :  { %2874 = vtanh.f32 %v2470_v61  ;;  %v2037_v43 = vadd.f32 %v2036_v59, %v1840_v5 }
 0x30b   :  { %v2660_v9 = vmul.f32 0.5, %v2596_v48 }
 0x30c   :  { %v1844_v56 = vpop.f32.mrf.mxu0  ;;  %v2226_v1 = vadd.f32 %v2225_v17, %v2037_v43  ;;  %2131 = vmatmul.f32.gmra.mxu1 %v4456_v15 }
 0x30d   :  { %2724 = vst [vmem:[#allocation2 + $0xd8] sm:$0xff] %v2660_v9  ;;  %v1845_v32 = vadd.f32 %v1844_v56, %v3931_v10 }
 0x30e   :  { %v2375_v20 = vadd.f32 %v2374_v45, %v2226_v1 }
 0x310   :  { %v2875_v55 = vpop.eup %2874  ;;  %v2472_v41 = vmul.f32 0.5, %v2375_v20  ;;  %v2229_v42 = vpop.f32.mrf.mxu2 }
 0x311   :  { %v2598_v14 = vadd.f32 1.0, %v2875_v55  ;;  %v2042_v36 = vpop.f32.mrf.mxu1  ;;  %v2378_v52 = vpop.f32.mrf.mxu3 }
 0x312   :  { %2876 = vtanh.f32 %v2472_v41  ;;  %v2043_v4 = vadd.f32 %v2042_v36, %v1845_v32 }
 0x313   :  { %v2662_v46 = vmul.f32 0.5, %v2598_v14 }
 0x314   :  { %v1849_v3 = vpop.f32.mrf.mxu0  ;;  %v2230_v18 = vadd.f32 %v2229_v42, %v2043_v4 }
 0x315   :  { %2726 = vst [vmem:[#allocation2 + $0xe8] sm:$0xff] %v2662_v46  ;;  %v1850_v2 = vadd.f32 %v1849_v3, %v3938_v44 }
 0x316   :  { %v2379_v13 = vadd.f32 %v2378_v52, %v2230_v18 }
 0x318   :  { %v2877_v24 = vpop.eup %2876  ;;  %v2474_v26 = vmul.f32 0.5, %v2379_v13  ;;  %v2233_v60 = vpop.f32.mrf.mxu2 }
 0x319   :  { %v2600_v63 = vadd.f32 1.0, %v2877_v24  ;;  %v2048_v53 = vpop.f32.mrf.mxu1  ;;  %v2382_v31 = vpop.f32.mrf.mxu3 }
 0x31a   :  { %2878 = vtanh.f32 %v2474_v26  ;;  %v2049_v10 = vadd.f32 %v2048_v53, %v1850_v2 }
 0x31b   :  { %v2664_v12 = vmul.f32 0.5, %v2600_v63 }
 0x31c   :  { %v1854_v50 = vpop.f32.mrf.mxu0  ;;  %v2234_v25 = vadd.f32 %v2233_v60, %v2049_v10 }
 0x31d   :  { %2728 = vst [vmem:[#allocation2 + $0xf8] sm:$0xff] %v2664_v12  ;;  %v1855_v30 = vadd.f32 %v1854_v50, %v3945_v29 }
 0x31e   :  { %v2383_v23 = vadd.f32 %v2382_v31, %v2234_v25 }
 0x320   :  { %v2879_v28 = vpop.eup %2878  ;;  %v2476_v39 = vmul.f32 0.5, %v2383_v23  ;;  %v2237_v62 = vpop.f32.mrf.mxu2 }
 0x321   :  { %v2602_v49 = vadd.f32 1.0, %v2879_v28  ;;  %v2054_v27 = vpop.f32.mrf.mxu1  ;;  %v2386_v7 = vpop.f32.mrf.mxu3 }
 0x322   :  { %2880 = vtanh.f32 %v2476_v39  ;;  %v2055_v44 = vadd.f32 %v2054_v27, %v1855_v30 }
 0x323   :  { %v2666_v33 = vmul.f32 0.5, %v2602_v49 }
 0x324   :  { %v1859_v47 = vpop.f32.mrf.mxu0  ;;  %v2238_v37 = vadd.f32 %v2237_v62, %v2055_v44 }
 0x325   :  { %2730 = vst [vmem:[#allocation2 + $0x108] sm:$0xff] %v2666_v33  ;;  %v1860_v0 = vadd.f32 %v1859_v47, %v3952_v19 }
 0x326   :  { %v2387_v22 = vadd.f32 %v2386_v7, %v2238_v37 }
 0x328   :  { %v2881_v34 = vpop.eup %2880  ;;  %v2478_v5 = vmul.f32 0.5, %v2387_v22  ;;  %v2241_v59 = vpop.f32.mrf.mxu2 }
 0x329   :  { %v2604_v61 = vadd.f32 1.0, %v2881_v34  ;;  %v2060_v48 = vpop.f32.mrf.mxu1  ;;  %v2390_v17 = vpop.f32.mrf.mxu3 }
 0x32a   :  { %2882 = vtanh.f32 %v2478_v5  ;;  %v2061_v29 = vadd.f32 %v2060_v48, %v1860_v0 }
 0x32b   :  { %v2668_v43 = vmul.f32 0.5, %v2604_v61 }
 0x32c   :  { %v1864_v45 = vpop.f32.mrf.mxu0  ;;  %v2242_v9 = vadd.f32 %v2241_v59, %v2061_v29 }
 0x32d   :  { %2732 = vst [vmem:[#allocation2 + $0x118] sm:$0xff] %v2668_v43  ;;  %v1865_v15 = vadd.f32 %v1864_v45, %v3959_v35 }
 0x32e   :  { %v2391_v56 = vadd.f32 %v2390_v17, %v2242_v9 }
 0x330   :  { %v2883_v1 = vpop.eup %2882  ;;  %v2480_v20 = vmul.f32 0.5, %v2391_v56  ;;  %v2245_v41 = vpop.f32.mrf.mxu2 }
 0x331   :  { %v2606_v55 = vadd.f32 1.0, %v2883_v1  ;;  %v2066_v32 = vpop.f32.mrf.mxu1  ;;  %v2394_v14 = vpop.f32.mrf.mxu3 }
 0x332   :  { %2884 = vtanh.f32 %v2480_v20  ;;  %v2067_v19 = vadd.f32 %v2066_v32, %v1865_v15 }
 0x333   :  { %v2670_v36 = vmul.f32 0.5, %v2606_v55 }
 0x334   :  { %v1869_v42 = vpop.f32.mrf.mxu0  ;;  %v2246_v4 = vadd.f32 %v2245_v41, %v2067_v19 }
 0x335   :  { %2734 = vst [vmem:[#allocation2 + $0x128] sm:$0xff] %v2670_v36  ;;  %v1870_v3 = vadd.f32 %v1869_v42, %v3966_v40 }
 0x336   :  { %v2395_v52 = vadd.f32 %v2394_v14, %v2246_v4 }
 0x338   :  { %v2885_v46 = vpop.eup %2884  ;;  %v2482_v18 = vmul.f32 0.5, %v2395_v52  ;;  %v2249_v2 = vpop.f32.mrf.mxu2 }
 0x339   :  { %v2608_v13 = vadd.f32 1.0, %v2885_v46  ;;  %v2072_v24 = vpop.f32.mrf.mxu1  ;;  %v2398_v26 = vpop.f32.mrf.mxu3 }
 0x33a   :  { %2886 = vtanh.f32 %v2482_v18  ;;  %v2073_v35 = vadd.f32 %v2072_v24, %v1870_v3 }
 0x33b   :  { %v2672_v63 = vmul.f32 0.5, %v2608_v13 }
 0x33c   :  { %v1874_v53 = vpop.f32.mrf.mxu0  ;;  %v2250_v60 = vadd.f32 %v2249_v2, %v2073_v35 }
 0x33d   :  { %2736 = vst [vmem:[#allocation2 + $0x138] sm:$0xff] %v2672_v63  ;;  %v1875_v12 = vadd.f32 %v1874_v53, %v3973_v6 }
 0x33e   :  { %v2399_v10 = vadd.f32 %v2398_v26, %v2250_v60 }
 0x340   :  { %v2887_v31 = vpop.eup %2886  ;;  %v2484_v50 = vmul.f32 0.5, %v2399_v10  ;;  %v2253_v28 = vpop.f32.mrf.mxu2 }
 0x341   :  { %v2610_v25 = vadd.f32 1.0, %v2887_v31  ;;  %v2078_v23 = vpop.f32.mrf.mxu1  ;;  %v2402_v30 = vpop.f32.mrf.mxu3 }
 0x342   :  { %2888 = vtanh.f32 %v2484_v50  ;;  %v2079_v40 = vadd.f32 %v2078_v23, %v1875_v12 }
 0x343   :  { %v2674_v39 = vmul.f32 0.5, %v2610_v25 }
 0x344   :  { %v1879_v49 = vpop.f32.mrf.mxu0  ;;  %v2254_v27 = vadd.f32 %v2253_v28, %v2079_v40 }
 0x345   :  { %2738 = vst [vmem:[#allocation2 + $0x148] sm:$0xff] %v2674_v39  ;;  %v1880_v7 = vadd.f32 %v1879_v49, %v3980_v38 }
 0x346   :  { %v2403_v62 = vadd.f32 %v2402_v30, %v2254_v27 }
 0x348   :  { %v2889_v44 = vpop.eup %2888  ;;  %v2486_v33 = vmul.f32 0.5, %v2403_v62  ;;  %v2257_v22 = vpop.f32.mrf.mxu2 }
 0x349   :  { %v2612_v47 = vadd.f32 1.0, %v2889_v44  ;;  %v2084_v37 = vpop.f32.mrf.mxu1  ;;  %v2406_v34 = vpop.f32.mrf.mxu3 }
 0x34a   :  { %2890 = vtanh.f32 %v2486_v33  ;;  %v2085_v6 = vadd.f32 %v2084_v37, %v1880_v7 }
 0x34b   :  { %v2676_v0 = vmul.f32 0.5, %v2612_v47 }
 0x34c   :  { %v1884_v5 = vpop.f32.mrf.mxu0  ;;  %v2258_v61 = vadd.f32 %v2257_v22, %v2085_v6 }
 0x34d   :  { %2740 = vst [vmem:[#allocation2 + $0x158] sm:$0xff] %v2676_v0  ;;  %v1885_v29 = vadd.f32 %v1884_v5, %v3987_v58 }
 0x34e   :  { %v2407_v48 = vadd.f32 %v2406_v34, %v2258_v61 }
 0x350   :  { %v2891_v59 = vpop.eup %2890  ;;  %v2488_v17 = vmul.f32 0.5, %v2407_v48  ;;  %v2261_v9 = vpop.f32.mrf.mxu2 }
 0x351   :  { %v2614_v43 = vadd.f32 1.0, %v2891_v59  ;;  %v2090_v45 = vpop.f32.mrf.mxu1  ;;  %v2410_v56 = vpop.f32.mrf.mxu3 }
 0x352   :  { %2892 = vtanh.f32 %v2488_v17  ;;  %v2091_v38 = vadd.f32 %v2090_v45, %v1885_v29 }
 0x353   :  { %v2678_v1 = vmul.f32 0.5, %v2614_v43 }
 0x354   :  { %v1889_v15 = vpop.f32.mrf.mxu0  ;;  %v2262_v20 = vadd.f32 %v2261_v9, %v2091_v38 }
 0x355   :  { %2742 = vst [vmem:[#allocation2 + $0x168] sm:$0xff] %v2678_v1  ;;  %v1890_v41 = vadd.f32 %v1889_v15, %v3994_v54 }
 0x356   :  { %v2411_v55 = vadd.f32 %v2410_v56, %v2262_v20 }
 0x358   :  { %v2893_v32 = vpop.eup %2892  ;;  %v2490_v19 = vmul.f32 0.5, %v2411_v55  ;;  %v2265_v42 = vpop.f32.mrf.mxu2 }
 0x359   :  { %v2616_v14 = vadd.f32 1.0, %v2893_v32  ;;  %v2096_v36 = vpop.f32.mrf.mxu1  ;;  %v2414_v4 = vpop.f32.mrf.mxu3 }
 0x35a   :  { %2894 = vtanh.f32 %v2490_v19  ;;  %v2097_v58 = vadd.f32 %v2096_v36, %v1890_v41 }
 0x35b   :  { %v2680_v52 = vmul.f32 0.5, %v2616_v14 }
 0x35c   :  { %v1894_v46 = vpop.f32.mrf.mxu0  ;;  %v2266_v3 = vadd.f32 %v2265_v42, %v2097_v58 }
 0x35d   :  { %2744 = vst [vmem:[#allocation2 + $0x178] sm:$0xff] %v2680_v52  ;;  %v1895_v24 = vadd.f32 %v1894_v46, %v4001_v16 }
 0x35e   :  { %v2415_v18 = vadd.f32 %v2414_v4, %v2266_v3 }
 0x360   :  { %v2895_v13 = vpop.eup %2894  ;;  %v2492_v2 = vmul.f32 0.5, %v2415_v18  ;;  %v2269_v63 = vpop.f32.mrf.mxu2 }
 0x361   :  { %v2618_v35 = vadd.f32 1.0, %v2895_v13  ;;  %v2102_v26 = vpop.f32.mrf.mxu1  ;;  %v2418_v53 = vpop.f32.mrf.mxu3 }
 0x362   :  { %2896 = vtanh.f32 %v2492_v2  ;;  %v2103_v54 = vadd.f32 %v2102_v26, %v1895_v24 }
 0x363   :  { %v2682_v60 = vmul.f32 0.5, %v2618_v35 }
 0x364   :  { %v1899_v10 = vpop.f32.mrf.mxu0  ;;  %v2270_v31 = vadd.f32 %v2269_v63, %v2103_v54 }
 0x365   :  { %2746 = vst [vmem:[#allocation2 + $0x188] sm:$0xff] %v2682_v60  ;;  %v1900_v25 = vadd.f32 %v1899_v10, %v4008_v51 }
 0x366   :  { %v2419_v12 = vadd.f32 %v2418_v53, %v2270_v31 }
 0x368   :  { %v2897_v50 = vpop.eup %2896  ;;  %v2494_v23 = vmul.f32 0.5, %v2419_v12  ;;  %v2273_v30 = vpop.f32.mrf.mxu2 }
 0x369   :  { %v2620_v28 = vadd.f32 1.0, %v2897_v50  ;;  %v2108_v40 = vpop.f32.mrf.mxu1  ;;  %v2422_v39 = vpop.f32.mrf.mxu3 }
 0x36a   :  { %2898 = vtanh.f32 %v2494_v23  ;;  %v2109_v16 = vadd.f32 %v2108_v40, %v1900_v25 }
 0x36b   :  { %v2684_v49 = vmul.f32 0.5, %v2620_v28 }
 0x36c   :  { %v1904_v27 = vpop.f32.mrf.mxu0  ;;  %v2274_v62 = vadd.f32 %v2273_v30, %v2109_v16 }
 0x36d   :  { %2748 = vst [vmem:[#allocation2 + $0x198] sm:$0xff] %v2684_v49  ;;  %v1905_v33 = vadd.f32 %v1904_v27, %v4015_v11 }
 0x36e   :  { %v2423_v44 = vadd.f32 %v2422_v39, %v2274_v62 }
 0x370   :  { %v2899_v7 = vpop.eup %2898  ;;  %v2496_v47 = vmul.f32 0.5, %v2423_v44  ;;  %v2277_v6 = vpop.f32.mrf.mxu2 }
 0x371   :  { %v2622_v37 = vadd.f32 1.0, %v2899_v7  ;;  %v2114_v22 = vpop.f32.mrf.mxu1  ;;  %v2426_v34 = vpop.f32.mrf.mxu3 }
 0x372   :  { %2900 = vtanh.f32 %v2496_v47  ;;  %v2115_v51 = vadd.f32 %v2114_v22, %v1905_v33 }
 0x373   :  { %v2686_v0 = vmul.f32 0.5, %v2622_v37 }
 0x374   :  { %v1909_v5 = vpop.f32.mrf.mxu0  ;;  %v2278_v61 = vadd.f32 %v2277_v6, %v2115_v51 }
 0x375   :  { %2750 = vst [vmem:[#allocation2 + $0x1a8] sm:$0xff] %v2686_v0  ;;  %v1910_v29 = vadd.f32 %v1909_v5, %v4022_v57 }
 0x376   :  { %v2427_v48 = vadd.f32 %v2426_v34, %v2278_v61 }
 0x378   :  { %v2901_v59 = vpop.eup %2900  ;;  %v2498_v17 = vmul.f32 0.5, %v2427_v48  ;;  %v2281_v9 = vpop.f32.mrf.mxu2 }
 0x379   :  { %v2624_v43 = vadd.f32 1.0, %v2901_v59  ;;  %v2120_v45 = vpop.f32.mrf.mxu1  ;;  %v2430_v38 = vpop.f32.mrf.mxu3 }
 0x37a   :  { %2902 = vtanh.f32 %v2498_v17  ;;  %v2121_v11 = vadd.f32 %v2120_v45, %v1910_v29 }
 0x37b   :  { %v2688_v56 = vmul.f32 0.5, %v2624_v43 }
 0x37c   :  { %v1914_v1 = vpop.f32.mrf.mxu0  ;;  %v2282_v15 = vadd.f32 %v2281_v9, %v2121_v11 }
 0x37d   :  { %2752 = vst [vmem:[#allocation2 + $0x1b8] sm:$0xff] %v2688_v56  ;;  %v1915_v32 = vadd.f32 %v1914_v1, %v4029_v21 }
 0x37e   :  { %v2431_v20 = vadd.f32 %v2430_v38, %v2282_v15 }
 0x380   :  { %v2903_v55 = vpop.eup %2902  ;;  %v2500_v41 = vmul.f32 0.5, %v2431_v20  ;;  %v2285_v36 = vpop.f32.mrf.mxu2 }
 0x381   :  { %v2626_v19 = vadd.f32 1.0, %v2903_v55  ;;  %v2126_v14 = vpop.f32.mrf.mxu1  ;;  %v2434_v42 = vpop.f32.mrf.mxu3 }
 0x382   :  { %2904 = vtanh.f32 %v2500_v41  ;;  %v2127_v57 = vadd.f32 %v2126_v14, %v1915_v32 }
 0x383   :  { %v2690_v58 = vmul.f32 0.5, %v2626_v19 }
 0x384   :  { %v2286_v4 = vadd.f32 %v2285_v36, %v2127_v57  ;;  %v1919_v52 = vpop.f32.mrf.mxu0 }
 0x385   :  { %2754 = vst [vmem:[#allocation2 + $0x1c8] sm:$0xff] %v2690_v58  ;;  %v1920_v18 = vadd.f32 %v1919_v52, %v4036_v8 }
 0x386   :  { %v2435_v46 = vadd.f32 %v2434_v42, %v2286_v4 }
 0x388   :  { %v2905_v3 = vpop.eup %2904  ;;  %v2502_v13 = vmul.f32 0.5, %v2435_v46  ;;  %v2289_v35 = vpop.f32.mrf.mxu2 }
 0x389   :  { %v2628_v24 = vadd.f32 1.0, %v2905_v3  ;;  %v2132_v2 = vpop.f32.mrf.mxu1  ;;  %v2438_v63 = vpop.f32.mrf.mxu3 }
 0x38a   :  { %2906 = vtanh.f32 %v2502_v13  ;;  %v2133_v21 = vadd.f32 %v2132_v2, %v1920_v18 }
 0x38b   :  { %v2692_v26 = vmul.f32 0.5, %v2628_v24 }
 0x38c   :  { %v2290_v54 = vadd.f32 %v2289_v35, %v2133_v21 }
 0x38d   :  { %2756 = vst [vmem:[#allocation2 + $0x1d8] sm:$0xff] %v2692_v26 }
 0x38e   :  { %v2439_v53 = vadd.f32 %v2438_v63, %v2290_v54 }
 0x390   :  { %v2907_v60 = vpop.eup %2906  ;;  %v2504_v10 = vmul.f32 0.5, %v2439_v53 }
 0x391   :  { %v2630_v31 = vadd.f32 1.0, %v2907_v60 }
 0x392   :  { %2908 = vtanh.f32 %v2504_v10 }
 0x393   :  { %v2694_v12 = vmul.f32 0.5, %v2630_v31 }
 0x395   :  { %2758 = vst [vmem:[#allocation2 + $0x1e8] sm:$0xff] %v2694_v12 }
 0x398   :  { %v2909_v8 = vpop.eup %2908 }
 0x399   :  { %v2632_v50 = vadd.f32 1.0, %v2909_v8 }
 0x39b   :  { %v2696_v25 = vmul.f32 0.5, %v2632_v50 }
 0x39d   :  { %2760 = vst [vmem:[#allocation2 + $0x1f8] sm:$0xff] %v2696_v25 }
 0x39e   :  { %2773 = dma.vmem_to_hbm [thread:$0]  %s2766_s4, 8192, %s2768_s7, [#allocation3], %s2937_s8, %s2937_s8, %s2938_s9  }
 0x39f   :  { %2934 = dma.done.wait [#allocation3], 8192  }
 0x3a0   :  { %2935 = vsyncadd [#allocation3], 4294959104 }
 0x3a1   :  { %2778 = vsyncpa [#allocation3], 1 }

</bundles_post_ra>
